<compile_context>
chip_gen: v7x
topology: tpu7x:2x2x1
jax: 0.10.0
libtpu: 0.0.40
codegen_flags: <defaults>
</compile_context>

<pallas_src>
import math
import functools

import jax
import jax.numpy as jnp
from jax.experimental import pallas as pl
from jax.experimental.pallas import tpu as pltpu

MAX_CLAMP_NORM = 40.0


def _cosh_sinhc(theta):
    """cosh(theta) and sinh(theta)/theta for theta >= 0, stable near 0 (f32)."""
    e = jnp.exp(theta)
    e_inv = jnp.exp(-theta)
    cosh = 0.5 * (e + e_inv)
    small = theta < 0.1
    t2 = theta * theta
    theta_safe = jnp.where(small, 1.0, theta)
    sinhc = jnp.where(
        small,
        1.0 + t2 * (1.0 / 6.0 + t2 * (1.0 / 120.0)),        # series, err < 1e-9 rel
        0.5 * (e - e_inv) / theta_safe,
    )
    return cosh, sinhc


# ----------------------------------------------------------------- fused kernel
def _fused_encoder_kernel(r_ref,                       # SMEM scalar: radius
                          a_ref, x_ref,                # adjacency (bf16), node features (bf16)
                          w0_ref, b0_ref,              # GCN 0 (W bf16, b f32)
                          w1_ref, b1_ref,              # GCN 1
                          wml_ref, bml_ref,            # merged mu|logvar GCN head
                          eps_ref,                     # reparametrization noise (f32)
                          out_ref,                     # lane-packed output slab (N, 5z+3) f32
                          *, z_dim):
    R = r_ref[0]
    inv_R = 1.0 / R

    bf = jnp.bfloat16
    a = a_ref[...]                                     # bf16 (N, N)

    # ---- conv1 = [GCN(in,hid), ReLU, GCN(hid,hid)] (n_blocks=1), then outer F.relu
    # Layer 0: aggregate first -- (A_hat @ X) @ W0 keeps the N x N matmul on the
    # narrow F axis. bf16 MXU operands, f32 accumulation.
    ax = jnp.dot(a, x_ref[...], preferred_element_type=jnp.float32)          # (N, F)
    h = jnp.dot(ax.astype(bf), w0_ref[...],
                preferred_element_type=jnp.float32) + b0_ref[...]            # (N, hid)
    h = jnp.maximum(h, 0.0)

    # Layer 1: hid -> hid, order irrelevant; transform then aggregate.
    h = jnp.dot(h.astype(bf), w1_ref[...], preferred_element_type=jnp.float32)
    h = jnp.dot(a, h.astype(bf), preferred_element_type=jnp.float32) + b1_ref[...]
    h = jnp.maximum(h, 0.0)

    # ---- merged mu / logvar heads: contract hid -> 2z first (2z < hid), then one
    # A_hat aggregation over 2z columns; split after.
    ml = jnp.dot(h.astype(bf), wml_ref[...], preferred_element_type=jnp.float32)
    ml = jnp.dot(a, ml.astype(bf), preferred_element_type=jnp.float32) + bml_ref[...]
    mu = ml[:, :z_dim]
    logvar = ml[:, z_dim:]

    # ---- hyperboloid head (VAE part), all f32
    mu = jnp.clip(mu, -MAX_CLAMP_NORM, MAX_CLAMP_NORM)
    std = jax.nn.softplus(logvar) + 1e-5

    # mu_h = exp_map_mu0((0, mu), R):
    #   time  = R * cosh(||mu|| / R)
    #   space = sinhc(||mu|| / R) * mu          (no 1/||mu|| needed -> stable at origin)
    mu_norm = jnp.sqrt(jnp.sum(mu * mu, axis=-1, keepdims=True))
    theta = mu_norm * inv_R
    cosh_t, sinhc_t = _cosh_sinhc(theta)
    muh_t = R * cosh_t                                                       # (N, 1)
    muh_s = sinhc_t * mu                                                     # (N, Z)

    # rsample of base Normal(0, std) in tangent space at mu0
    v_tilde = eps_ref[...] * std                                             # (N, Z)

    # u = parallel_transport_mu0((0, v_tilde), dst=mu_h)
    #   <mu_h, v>_L = sum_i muh_s_i * v_i   (time component of v is 0)
    lp = jnp.sum(muh_s * v_tilde, axis=-1, keepdims=True)
    u_t = lp * inv_R                                   # (R + muh_t) factors cancel exactly
    coef = lp * inv_R * pl.reciprocal(R + muh_t, approx=True)   # EUP; R+muh_t >= 2R
    u_s = v_tilde + coef * muh_s

    # z_0 = exp_map(u, at=mu_h); ||u||_L^2 = -u_t^2 + ||u_s||^2
    u_sq = jnp.maximum(-u_t * u_t + jnp.sum(u_s * u_s, axis=-1, keepdims=True), 0.0)
    th = jnp.sqrt(u_sq) * inv_R
    ch, shc = _cosh_sinhc(th)
    z_t = ch * muh_t + shc * u_t
    z_s = ch * muh_s + shc * u_s

    # ---- single lane-packed output slab, columns at fixed offsets:
    #   [0, z+1)      z_0      (time, space)
    #   [z+1, 2z+2)   mu_h     (time, space)
    #   [2z+2, 3z+2)  std
    #   [3z+2, 4z+2)  v_tilde  (data[0])
    #   [4z+2, 5z+3)  u        (time, space) (data[1])
    z = z_dim
    out_ref[:, 0:1] = z_t
    out_ref[:, 1:z + 1] = z_s
    out_ref[:, z + 1:z + 2] = muh_t
    out_ref[:, z + 2:2 * z + 2] = muh_s
    out_ref[:, 2 * z + 2:3 * z + 2] = std
    out_ref[:, 3 * z + 2:4 * z + 2] = v_tilde
    out_ref[:, 4 * z + 2:4 * z + 3] = u_t
    out_ref[:, 4 * z + 3:5 * z + 3] = u_s


# ------------------------------------------------------------------ forward
def hyperboloid_encoder_forward(params, x, a_hat, eps):
    n, z = eps.shape
    hid = params["conv1_w0"].shape[1]
    out_w = 5 * z + 3
    bf = jnp.bfloat16

    # Merge the mu / logvar GCN heads into a single weight/bias (split in-kernel).
    w_ml = jnp.concatenate([params["mu_w"], params["lv_w"]], axis=1)    # (hid, 2Z)
    b_ml = jnp.concatenate([params["mu_b"], params["lv_b"]], axis=0)    # (2Z,)

    vmem = pl.BlockSpec(memory_space=pltpu.MemorySpace.VMEM)
    smem = pl.BlockSpec(memory_space=pltpu.MemorySpace.SMEM)

    out = pl.pallas_call(
        functools.partial(_fused_encoder_kernel, z_dim=z),
        out_shape=jax.ShapeDtypeStruct((n, out_w), jnp.float32),
        in_specs=[smem] + [vmem] * 9,
        out_specs=vmem,
        compiler_params=pltpu.CompilerParams(vmem_limit_bytes=64 * 1024 * 1024),
    )(
        jnp.full((1,), params["radius"], jnp.float32),                  # radius -> SMEM scalar
        a_hat.astype(bf), x.astype(bf),                                 # bf16 MXU operands
        params["conv1_w0"].astype(bf), params["conv1_b0"].reshape(1, hid).astype(jnp.float32),
        params["conv1_w1"].astype(bf), params["conv1_b1"].reshape(1, hid).astype(jnp.float32),
        w_ml.astype(bf), b_ml.reshape(1, 2 * z).astype(jnp.float32),
        eps,
    )

    # Cheap fixed-offset slices of the single packed slab (no concats).
    z0 = out[:, 0:z + 1]
    mu_h = out[:, z + 1:2 * z + 2]
    std = out[:, 2 * z + 2:3 * z + 2]
    v_tilde = out[:, 3 * z + 2:4 * z + 2]
    u = out[:, 4 * z + 2:5 * z + 3]

    # TODO(synk): flow_model / KL / log_prob paths are not part of forward();
    # distribution objects (q_z, p_z) are not materialized -- the reparametrized
    # sample and its parts (v_tilde, u) are computed directly.
    return z0, mu_h, std, (v_tilde, u)


# ------------------------------------------------------------------ reference (pure JAX)
def _reference_forward(params, x, a_hat, eps):
    bf = jnp.bfloat16
    R = jnp.float32(params["radius"])
    a = a_hat.astype(bf)

    def agg(m):  # A_hat @ m with bf16 MXU operands, f32 accumulation
        return jnp.dot(a, m.astype(bf), preferred_element_type=jnp.float32)

    h = jnp.dot(agg(x).astype(bf), params["conv1_w0"].astype(bf),
                preferred_element_type=jnp.float32) + params["conv1_b0"]
    h = jnp.maximum(h, 0.0)
    h = agg(jnp.dot(h.astype(bf), params["conv1_w1"].astype(bf),
                    preferred_element_type=jnp.float32)) + params["conv1_b1"]
    h = jnp.maximum(h, 0.0)
    mu = agg(jnp.dot(h.astype(bf), params["mu_w"].astype(bf),
                     preferred_element_type=jnp.float32)) + params["mu_b"]
    logvar = agg(jnp.dot(h.astype(bf), params["lv_w"].astype(bf),
                         preferred_element_type=jnp.float32)) + params["lv_b"]

    mu = jnp.clip(mu, -MAX_CLAMP_NORM, MAX_CLAMP_NORM)
    std = jax.nn.softplus(logvar) + 1e-5

    def sinhc(t):
        return jnp.where(t < 1e-6, 1.0, jnp.sinh(t) / jnp.maximum(t, 1e-30))

    theta = jnp.linalg.norm(mu, axis=-1, keepdims=True) / R
    muh_t = R * jnp.cosh(theta)
    muh_s = sinhc(theta) * mu
    v = eps * std
    lp = jnp.sum(muh_s * v, axis=-1, keepdims=True)
    u_t = lp / R
    u_s = v + lp / (R * (R + muh_t)) * muh_s
    u_sq = jnp.maximum(-u_t * u_t + jnp.sum(u_s * u_s, axis=-1, keepdims=True), 0.0)
    th = jnp.sqrt(u_sq) / R
    z_t = jnp.cosh(th) * muh_t + sinhc(th) * u_t
    z_s = jnp.cosh(th) * muh_s + sinhc(th) * u_s
    return (jnp.concatenate([z_t, z_s], -1), jnp.concatenate([muh_t, muh_s], -1),
            std, (v, jnp.concatenate([u_t, u_s], -1)))


# ------------------------------------------------------------------ main
if __name__ == "__main__":
    N, input_dim, hidden_dim, z_dim = 32, 16, 32, 8

    key = jax.random.PRNGKey(0)
    k = jax.random.split(key, 8)

    def glorot(kk, fan_in, fan_out):
        lim = math.sqrt(6.0 / (fan_in + fan_out))
        return jax.random.uniform(kk, (fan_in, fan_out), jnp.float32, -lim, lim)

    params = {
        "conv1_w0": glorot(k[0], input_dim, hidden_dim),
        "conv1_b0": jnp.zeros((hidden_dim,), jnp.float32),
        "conv1_w1": glorot(k[1], hidden_dim, hidden_dim),
        "conv1_b1": jnp.zeros((hidden_dim,), jnp.float32),
        "mu_w": glorot(k[2], hidden_dim, z_dim),
        "mu_b": jnp.zeros((z_dim,), jnp.float32),
        "lv_w": glorot(k[3], hidden_dim, z_dim),
        "lv_b": jnp.zeros((z_dim,), jnp.float32),
        "radius": 1.0,  # fixed curvature parameter
    }

    # node features
    x = jax.random.normal(k[4], (N, input_dim), jnp.float32)

    # ring-graph edge_index of shape (2, 2N), undirected
    src = jnp.arange(N, dtype=jnp.int32)
    dst = (src + 1) % N
    edge_index = jnp.stack(
        [jnp.concatenate([src, dst]), jnp.concatenate([dst, src])], axis=0)

    # glue: dense GCN normalization  A_hat = D^-1/2 (A + I) D^-1/2
    adj = jnp.zeros((N, N), jnp.float32).at[edge_index[0], edge_index[1]].set(1.0)
    adj = adj + jnp.eye(N, dtype=jnp.float32)
    deg = jnp.sum(adj, axis=1)
    dinv = 1.0 / jnp.sqrt(deg)
    a_hat = adj * dinv[:, None] * dinv[None, :]

    # reparametrization noise (rsample eps ~ N(0, 1))
    eps = jax.random.normal(k[5], (N, z_dim), jnp.float32)

    z0, mu_h, std, data = hyperboloid_encoder_forward(params, x, a_hat, eps)
    jax.block_until_ready((z0, mu_h, std, data))
    v_tilde, u = data

    assert z0.shape == (N, z_dim + 1) and mu_h.shape == (N, z_dim + 1)
    assert std.shape == (N, z_dim)
    assert v_tilde.shape == (N, z_dim) and u.shape == (N, z_dim + 1)
    assert bool(jnp.isfinite(z0).all())
    assert bool(jnp.isfinite(mu_h).all())
    assert bool(jnp.isfinite(std).all())
    assert bool(jnp.isfinite(u).all())

    # correctness check vs. pure-JAX reference (same bf16 matmul casts, f32 head)
    r_z0, r_muh, r_std, (r_v, r_u) = _reference_forward(params, x, a_hat, eps)
    for got, ref in ((z0, r_z0), (mu_h, r_muh), (std, r_std), (v_tilde, r_v), (u, r_u)):
        assert bool(jnp.allclose(got, ref, rtol=2e-2, atol=2e-2))

    print("KERNEL_OK")
</pallas_src>

<mosaic_0001>
module attributes {stable_mosaic.version = 11 : i64} {
  func.func @_fused_encoder_kernel(%arg0: memref<1xf32, #tpu.memory_space<smem>>, %arg1: memref<32x32xbf16, #tpu.memory_space<vmem>>, %arg2: memref<32x16xbf16, #tpu.memory_space<vmem>>, %arg3: memref<16x32xbf16, #tpu.memory_space<vmem>>, %arg4: memref<1x32xf32, #tpu.memory_space<vmem>>, %arg5: memref<32x32xbf16, #tpu.memory_space<vmem>>, %arg6: memref<1x32xf32, #tpu.memory_space<vmem>>, %arg7: memref<32x16xbf16, #tpu.memory_space<vmem>>, %arg8: memref<1x16xf32, #tpu.memory_space<vmem>>, %arg9: memref<32x8xf32, #tpu.memory_space<vmem>>, %arg10: memref<32x43xf32, #tpu.memory_space<vmem>>) attributes {dimension_semantics = [], scalar_prefetch = 0 : i64, scratch_operands = 0 : i64, tpu.core_type = #tpu.core_type<tc>} {
    %c0 = arith.constant 0 : index
    %0 = memref.load %arg0[%c0] : memref<1xf32, #tpu.memory_space<smem>>
    %cst = arith.constant 1.000000e+00 : f32
    %1 = arith.divf %cst, %0 : f32
    %c0_0 = arith.constant 0 : index
    %c0_1 = arith.constant 0 : index
    %2 = vector.load %arg1[%c0_0, %c0_1] : memref<32x32xbf16, #tpu.memory_space<vmem>>, vector<32x32xbf16>
    %c0_2 = arith.constant 0 : index
    %c0_3 = arith.constant 0 : index
    %3 = vector.load %arg2[%c0_2, %c0_3] : memref<32x16xbf16, #tpu.memory_space<vmem>>, vector<32x16xbf16>
    %cst_4 = arith.constant dense<0.000000e+00> : vector<32x16xf32>
    %4 = tpu.matmul %2, %3, %cst_4 {dimension_numbers = #tpu.dot_dimension_numbers<[1], [0], [0], [1], [0, 0, 1, 1], [], []>} : vector<32x32xbf16>, vector<32x16xbf16>, vector<32x16xf32> -> vector<32x16xf32>
    %5 = arith.truncf %4 : vector<32x16xf32> to vector<32x16xbf16>
    %c0_5 = arith.constant 0 : index
    %c0_6 = arith.constant 0 : index
    %6 = vector.load %arg3[%c0_5, %c0_6] : memref<16x32xbf16, #tpu.memory_space<vmem>>, vector<16x32xbf16>
    %cst_7 = arith.constant dense<0.000000e+00> : vector<32x32xf32>
    %7 = tpu.matmul %5, %6, %cst_7 {dimension_numbers = #tpu.dot_dimension_numbers<[1], [0], [0], [1], [0, 0, 1, 1], [], []>} : vector<32x16xbf16>, vector<16x32xbf16>, vector<32x32xf32> -> vector<32x32xf32>
    %c0_8 = arith.constant 0 : index
    %c0_9 = arith.constant 0 : index
    %8 = vector.load %arg4[%c0_8, %c0_9] : memref<1x32xf32, #tpu.memory_space<vmem>>, vector<1x32xf32>
    %9 = vector.broadcast %8 : vector<1x32xf32> to vector<32x32xf32>
    %10 = arith.addf %7, %9 : vector<32x32xf32>
    %cst_10 = arith.constant 0.000000e+00 : f32
    %11 = vector.broadcast %cst_10 : f32 to vector<32x32xf32>
    %12 = arith.maximumf %10, %11 : vector<32x32xf32>
    %13 = arith.truncf %12 : vector<32x32xf32> to vector<32x32xbf16>
    %c0_11 = arith.constant 0 : index
    %c0_12 = arith.constant 0 : index
    %14 = vector.load %arg5[%c0_11, %c0_12] : memref<32x32xbf16, #tpu.memory_space<vmem>>, vector<32x32xbf16>
    %cst_13 = arith.constant dense<0.000000e+00> : vector<32x32xf32>
    %15 = tpu.matmul %13, %14, %cst_13 {dimension_numbers = #tpu.dot_dimension_numbers<[1], [0], [0], [1], [0, 0, 1, 1], [], []>} : vector<32x32xbf16>, vector<32x32xbf16>, vector<32x32xf32> -> vector<32x32xf32>
    %16 = arith.truncf %15 : vector<32x32xf32> to vector<32x32xbf16>
    %cst_14 = arith.constant dense<0.000000e+00> : vector<32x32xf32>
    %17 = tpu.matmul %2, %16, %cst_14 {dimension_numbers = #tpu.dot_dimension_numbers<[1], [0], [0], [1], [0, 0, 1, 1], [], []>} : vector<32x32xbf16>, vector<32x32xbf16>, vector<32x32xf32> -> vector<32x32xf32>
    %c0_15 = arith.constant 0 : index
    %c0_16 = arith.constant 0 : index
    %18 = vector.load %arg6[%c0_15, %c0_16] : memref<1x32xf32, #tpu.memory_space<vmem>>, vector<1x32xf32>
    %19 = vector.broadcast %18 : vector<1x32xf32> to vector<32x32xf32>
    %20 = arith.addf %17, %19 : vector<32x32xf32>
    %cst_17 = arith.constant 0.000000e+00 : f32
    %21 = vector.broadcast %cst_17 : f32 to vector<32x32xf32>
    %22 = arith.maximumf %20, %21 : vector<32x32xf32>
    %23 = arith.truncf %22 : vector<32x32xf32> to vector<32x32xbf16>
    %c0_18 = arith.constant 0 : index
    %c0_19 = arith.constant 0 : index
    %24 = vector.load %arg7[%c0_18, %c0_19] : memref<32x16xbf16, #tpu.memory_space<vmem>>, vector<32x16xbf16>
    %cst_20 = arith.constant dense<0.000000e+00> : vector<32x16xf32>
    %25 = tpu.matmul %23, %24, %cst_20 {dimension_numbers = #tpu.dot_dimension_numbers<[1], [0], [0], [1], [0, 0, 1, 1], [], []>} : vector<32x32xbf16>, vector<32x16xbf16>, vector<32x16xf32> -> vector<32x16xf32>
    %26 = arith.truncf %25 : vector<32x16xf32> to vector<32x16xbf16>
    %cst_21 = arith.constant dense<0.000000e+00> : vector<32x16xf32>
    %27 = tpu.matmul %2, %26, %cst_21 {dimension_numbers = #tpu.dot_dimension_numbers<[1], [0], [0], [1], [0, 0, 1, 1], [], []>} : vector<32x32xbf16>, vector<32x16xbf16>, vector<32x16xf32> -> vector<32x16xf32>
    %c0_22 = arith.constant 0 : index
    %c0_23 = arith.constant 0 : index
    %28 = vector.load %arg8[%c0_22, %c0_23] : memref<1x16xf32, #tpu.memory_space<vmem>>, vector<1x16xf32>
    %29 = vector.broadcast %28 : vector<1x16xf32> to vector<32x16xf32>
    %30 = arith.addf %27, %29 : vector<32x16xf32>
    %31 = vector.extract_strided_slice %30 {offsets = [0, 0], sizes = [32, 8], strides = [1, 1]} : vector<32x16xf32> to vector<32x8xf32>
    %32 = vector.extract_strided_slice %30 {offsets = [0, 8], sizes = [32, 8], strides = [1, 1]} : vector<32x16xf32> to vector<32x8xf32>
    %cst_24 = arith.constant -4.000000e+01 : f32
    %cst_25 = arith.constant 4.000000e+01 : f32
    %33 = vector.broadcast %cst_24 : f32 to vector<32x8xf32>
    %34 = arith.maximumf %33, %31 : vector<32x8xf32>
    %35 = vector.broadcast %cst_25 : f32 to vector<32x8xf32>
    %36 = arith.minimumf %35, %34 : vector<32x8xf32>
    %cst_26 = arith.constant 0.000000e+00 : f32
    %37 = vector.broadcast %cst_26 : f32 to vector<32x8xf32>
    %38 = arith.maximumf %32, %37 : vector<32x8xf32>
    %39 = vector.broadcast %cst_26 : f32 to vector<32x8xf32>
    %40 = arith.subf %32, %39 : vector<32x8xf32>
    %41 = arith.cmpf one, %40, %40 : vector<32x8xf32>
    %42 = vector.broadcast %cst_26 : f32 to vector<32x8xf32>
    %43 = arith.addf %32, %42 : vector<32x8xf32>
    %44 = math.absf %40 : vector<32x8xf32>
    %cst_27 = arith.constant 0.000000e+00 : f32
    %45 = vector.broadcast %cst_27 : f32 to vector<32x8xf32>
    %46 = arith.subf %45, %44 : vector<32x8xf32>
    %47 = math.exp %46 : vector<32x8xf32>
    %48 = math.log1p %47 : vector<32x8xf32>
    %49 = arith.addf %38, %48 : vector<32x8xf32>
    %50 = arith.select %41, %43, %49 : vector<32x8xi1>, vector<32x8xf32>
    %cst_28 = arith.constant 9.99999974E-6 : f32
    %51 = vector.broadcast %cst_28 : f32 to vector<32x8xf32>
    %52 = arith.addf %50, %51 : vector<32x8xf32>
    %53 = arith.mulf %36, %36 : vector<32x8xf32>
    %cst_29 = arith.constant dense<0.000000e+00> : vector<32xf32>
    %54 = vector.multi_reduction <add>, %53, %cst_29 [1] : vector<32x8xf32> to vector<32xf32>
    %55 = vector.shape_cast %54 : vector<32xf32> to vector<32x1xf32>
    %56 = math.sqrt %55 : vector<32x1xf32>
    %57 = vector.broadcast %1 : f32 to vector<32x1xf32>
    %58 = arith.mulf %56, %57 : vector<32x1xf32>
    %59 = math.exp %58 : vector<32x1xf32>
    %cst_30 = arith.constant 0.000000e+00 : f32
    %60 = vector.broadcast %cst_30 : f32 to vector<32x1xf32>
    %61 = arith.subf %60, %58 : vector<32x1xf32>
    %62 = math.exp %61 : vector<32x1xf32>
    %63 = arith.addf %59, %62 : vector<32x1xf32>
    %cst_31 = arith.constant 5.000000e-01 : f32
    %64 = vector.broadcast %cst_31 : f32 to vector<32x1xf32>
    %65 = arith.mulf %64, %63 : vector<32x1xf32>
    %cst_32 = arith.constant 1.000000e-01 : f32
    %66 = vector.broadcast %cst_32 : f32 to vector<32x1xf32>
    %67 = arith.cmpf olt, %58, %66 : vector<32x1xf32>
    %68 = arith.mulf %58, %58 : vector<32x1xf32>
    %cst_33 = arith.constant 1.000000e+00 : f32
    %69 = vector.broadcast %cst_33 : f32 to vector<32x1xf32>
    %70 = arith.select %67, %69, %58 : vector<32x1xi1>, vector<32x1xf32>
    %cst_34 = arith.constant 0.00833333377 : f32
    %71 = vector.broadcast %cst_34 : f32 to vector<32x1xf32>
    %72 = arith.mulf %68, %71 : vector<32x1xf32>
    %cst_35 = arith.constant 0.166666672 : f32
    %73 = vector.broadcast %cst_35 : f32 to vector<32x1xf32>
    %74 = arith.addf %73, %72 : vector<32x1xf32>
    %75 = arith.mulf %68, %74 : vector<32x1xf32>
    %cst_36 = arith.constant 1.000000e+00 : f32
    %76 = vector.broadcast %cst_36 : f32 to vector<32x1xf32>
    %77 = arith.addf %76, %75 : vector<32x1xf32>
    %78 = arith.subf %59, %62 : vector<32x1xf32>
    %cst_37 = arith.constant 5.000000e-01 : f32
    %79 = vector.broadcast %cst_37 : f32 to vector<32x1xf32>
    %80 = arith.mulf %79, %78 : vector<32x1xf32>
    %81 = arith.divf %80, %70 : vector<32x1xf32>
    %82 = arith.select %67, %77, %81 : vector<32x1xi1>, vector<32x1xf32>
    %83 = vector.broadcast %0 : f32 to vector<32x1xf32>
    %84 = arith.mulf %83, %65 : vector<32x1xf32>
    %85 = vector.broadcast %82 : vector<32x1xf32> to vector<32x8xf32>
    %86 = arith.mulf %85, %36 : vector<32x8xf32>
    %c0_38 = arith.constant 0 : index
    %c0_39 = arith.constant 0 : index
    %87 = vector.load %arg9[%c0_38, %c0_39] : memref<32x8xf32, #tpu.memory_space<vmem>>, vector<32x8xf32>
    %88 = arith.mulf %87, %52 : vector<32x8xf32>
    %89 = arith.mulf %86, %88 : vector<32x8xf32>
    %cst_40 = arith.constant dense<0.000000e+00> : vector<32xf32>
    %90 = vector.multi_reduction <add>, %89, %cst_40 [1] : vector<32x8xf32> to vector<32xf32>
    %91 = vector.shape_cast %90 : vector<32xf32> to vector<32x1xf32>
    %92 = vector.broadcast %1 : f32 to vector<32x1xf32>
    %93 = arith.mulf %91, %92 : vector<32x1xf32>
    %94 = vector.broadcast %1 : f32 to vector<32x1xf32>
    %95 = arith.mulf %91, %94 : vector<32x1xf32>
    %96 = vector.broadcast %0 : f32 to vector<32x1xf32>
    %97 = arith.addf %96, %84 : vector<32x1xf32>
    %98 = tpu.reciprocal %97 {approx = true} : vector<32x1xf32> -> vector<32x1xf32>
    %99 = arith.mulf %95, %98 : vector<32x1xf32>
    %100 = vector.broadcast %99 : vector<32x1xf32> to vector<32x8xf32>
    %101 = arith.mulf %100, %86 : vector<32x8xf32>
    %102 = arith.addf %88, %101 : vector<32x8xf32>
    %cst_41 = arith.constant 0.000000e+00 : f32
    %103 = vector.broadcast %cst_41 : f32 to vector<32x1xf32>
    %104 = arith.subf %103, %93 : vector<32x1xf32>
    %105 = arith.mulf %104, %93 : vector<32x1xf32>
    %106 = arith.mulf %102, %102 : vector<32x8xf32>
    %cst_42 = arith.constant dense<0.000000e+00> : vector<32xf32>
    %107 = vector.multi_reduction <add>, %106, %cst_42 [1] : vector<32x8xf32> to vector<32xf32>
    %108 = vector.shape_cast %107 : vector<32xf32> to vector<32x1xf32>
    %109 = arith.addf %105, %108 : vector<32x1xf32>
    %cst_43 = arith.constant 0.000000e+00 : f32
    %110 = vector.broadcast %cst_43 : f32 to vector<32x1xf32>
    %111 = arith.maximumf %109, %110 : vector<32x1xf32>
    %112 = math.sqrt %111 : vector<32x1xf32>
    %113 = vector.broadcast %1 : f32 to vector<32x1xf32>
    %114 = arith.mulf %112, %113 : vector<32x1xf32>
    %115 = math.exp %114 : vector<32x1xf32>
    %cst_44 = arith.constant 0.000000e+00 : f32
    %116 = vector.broadcast %cst_44 : f32 to vector<32x1xf32>
    %117 = arith.subf %116, %114 : vector<32x1xf32>
    %118 = math.exp %117 : vector<32x1xf32>
    %119 = arith.addf %115, %118 : vector<32x1xf32>
    %cst_45 = arith.constant 5.000000e-01 : f32
    %120 = vector.broadcast %cst_45 : f32 to vector<32x1xf32>
    %121 = arith.mulf %120, %119 : vector<32x1xf32>
    %cst_46 = arith.constant 1.000000e-01 : f32
    %122 = vector.broadcast %cst_46 : f32 to vector<32x1xf32>
    %123 = arith.cmpf olt, %114, %122 : vector<32x1xf32>
    %124 = arith.mulf %114, %114 : vector<32x1xf32>
    %cst_47 = arith.constant 1.000000e+00 : f32
    %125 = vector.broadcast %cst_47 : f32 to vector<32x1xf32>
    %126 = arith.select %123, %125, %114 : vector<32x1xi1>, vector<32x1xf32>
    %cst_48 = arith.constant 0.00833333377 : f32
    %127 = vector.broadcast %cst_48 : f32 to vector<32x1xf32>
    %128 = arith.mulf %124, %127 : vector<32x1xf32>
    %cst_49 = arith.constant 0.166666672 : f32
    %129 = vector.broadcast %cst_49 : f32 to vector<32x1xf32>
    %130 = arith.addf %129, %128 : vector<32x1xf32>
    %131 = arith.mulf %124, %130 : vector<32x1xf32>
    %cst_50 = arith.constant 1.000000e+00 : f32
    %132 = vector.broadcast %cst_50 : f32 to vector<32x1xf32>
    %133 = arith.addf %132, %131 : vector<32x1xf32>
    %134 = arith.subf %115, %118 : vector<32x1xf32>
    %cst_51 = arith.constant 5.000000e-01 : f32
    %135 = vector.broadcast %cst_51 : f32 to vector<32x1xf32>
    %136 = arith.mulf %135, %134 : vector<32x1xf32>
    %137 = arith.divf %136, %126 : vector<32x1xf32>
    %138 = arith.select %123, %133, %137 : vector<32x1xi1>, vector<32x1xf32>
    %139 = arith.mulf %121, %84 : vector<32x1xf32>
    %140 = arith.mulf %138, %93 : vector<32x1xf32>
    %141 = arith.addf %139, %140 : vector<32x1xf32>
    %142 = vector.broadcast %121 : vector<32x1xf32> to vector<32x8xf32>
    %143 = arith.mulf %142, %86 : vector<32x8xf32>
    %144 = vector.broadcast %138 : vector<32x1xf32> to vector<32x8xf32>
    %145 = arith.mulf %144, %102 : vector<32x8xf32>
    %146 = arith.addf %143, %145 : vector<32x8xf32>
    %c0_52 = arith.constant 0 : index
    %c0_53 = arith.constant 0 : index
    %147 = vector.load %arg10[%c0_52, %c0_53] : memref<32x43xf32, #tpu.memory_space<vmem>>, vector<32x1xf32>
    tpu.vector_store %arg10[%c0_52, %c0_53], %141 {strides = array<i32>} : memref<32x43xf32, #tpu.memory_space<vmem>>, vector<32x1xf32>,
    %c0_54 = arith.constant 0 : index
    %c1 = arith.constant 1 : index
    %148 = vector.load %arg10[%c0_54, %c1] : memref<32x43xf32, #tpu.memory_space<vmem>>, vector<32x8xf32>
    tpu.vector_store %arg10[%c0_54, %c1], %146 {strides = array<i32>} : memref<32x43xf32, #tpu.memory_space<vmem>>, vector<32x8xf32>,
    %c0_55 = arith.constant 0 : index
    %c9 = arith.constant 9 : index
    %149 = vector.load %arg10[%c0_55, %c9] : memref<32x43xf32, #tpu.memory_space<vmem>>, vector<32x1xf32>
    tpu.vector_store %arg10[%c0_55, %c9], %84 {strides = array<i32>} : memref<32x43xf32, #tpu.memory_space<vmem>>, vector<32x1xf32>,
    %c0_56 = arith.constant 0 : index
    %c10 = arith.constant 10 : index
    %150 = vector.load %arg10[%c0_56, %c10] : memref<32x43xf32, #tpu.memory_space<vmem>>, vector<32x8xf32>
    tpu.vector_store %arg10[%c0_56, %c10], %86 {strides = array<i32>} : memref<32x43xf32, #tpu.memory_space<vmem>>, vector<32x8xf32>,
    %c0_57 = arith.constant 0 : index
    %c18 = arith.constant 18 : index
    %151 = vector.load %arg10[%c0_57, %c18] : memref<32x43xf32, #tpu.memory_space<vmem>>, vector<32x8xf32>
    tpu.vector_store %arg10[%c0_57, %c18], %52 {strides = array<i32>} : memref<32x43xf32, #tpu.memory_space<vmem>>, vector<32x8xf32>,
    %c0_58 = arith.constant 0 : index
    %c26 = arith.constant 26 : index
    %152 = vector.load %arg10[%c0_58, %c26] : memref<32x43xf32, #tpu.memory_space<vmem>>, vector<32x8xf32>
    tpu.vector_store %arg10[%c0_58, %c26], %88 {strides = array<i32>} : memref<32x43xf32, #tpu.memory_space<vmem>>, vector<32x8xf32>,
    %c0_59 = arith.constant 0 : index
    %c34 = arith.constant 34 : index
    %153 = vector.load %arg10[%c0_59, %c34] : memref<32x43xf32, #tpu.memory_space<vmem>>, vector<32x1xf32>
    tpu.vector_store %arg10[%c0_59, %c34], %93 {strides = array<i32>} : memref<32x43xf32, #tpu.memory_space<vmem>>, vector<32x1xf32>,
    %c0_60 = arith.constant 0 : index
    %c35 = arith.constant 35 : index
    %154 = vector.load %arg10[%c0_60, %c35] : memref<32x43xf32, #tpu.memory_space<vmem>>, vector<32x8xf32>
    tpu.vector_store %arg10[%c0_60, %c35], %102 {strides = array<i32>} : memref<32x43xf32, #tpu.memory_space<vmem>>, vector<32x8xf32>,
    return
  }
}

</mosaic_0001>

<bundles_post_ra>
// kernel: tpu_custom_call.1
= control target key start
LH: loop header
LB: loop body
LE: loop exit
PB: predicated region body
PF: predicated region fallthrough
CT: control target
= control target key end

     0   :  { %16 = vsyncpa [#allocation4], 0  ;;  %s2241_s0 = inlined_call_operand.<no memory space> [shape: f32[1], index: 0, kind: input, shape index: {}]   ;;  %s2242_s1 = inlined_call_operand.hbm [shape: bf16[32,32], index: 1, kind: input, shape index: {}]   ;;  %s2243_s2 = inlined_call_operand.hbm [shape: bf16[32,16], index: 2, kind: input, shape index: {}]   ;;  %s2244_s3 = inlined_call_operand.hbm [shape: bf16[16,32], index: 3, kind: input, shape index: {}]   ;;  %s2245_s4 = inlined_call_operand.hbm [shape: f32[1,32], index: 4, kind: input, shape index: {}]   ;;  %s2246_s5 = inlined_call_operand.hbm [shape: bf16[32,32], index: 5, kind: input, shape index: {}]   ;;  %s2247_s6 = inlined_call_operand.hbm [shape: f32[1,32], index: 6, kind: input, shape index: {}]   ;;  %s2248_s7 = inlined_call_operand.hbm [shape: bf16[32,16], index: 7, kind: input, shape index: {}]   ;;  %s2249_s8 = inlined_call_operand.hbm [shape: f32[1,16], index: 8, kind: input, shape index: {}]   ;;  %s2250_s9 = inlined_call_operand.hbm [shape: f32[32,8], index: 9, kind: input, shape index: {}]   ;;  %s2251_s10 = inlined_call_operand.hbm [shape: f32[32,43], index: 10, kind: output, shape index: {}]  }
   0x1   :  { %17 = vsyncpa [#allocation7], 0 }
   0x2   :  { %18 = vsyncpa [#allocation10], 0 }
   0x3   :  { %19 = vsyncpa [#allocation13], 0 }
   0x4   :  { %20 = vsyncpa [#allocation16], 0 }
   0x5   :  { %21 = vsyncpa [#allocation5], 0  ;;  %s1620_s13 = smov [#allocation6]   ;;  %s1621_s15 = smov [#allocation9]  }
   0x6   :  { %s41_s14 = sshll.u32 %s1620_s13, 4  ;;  %s66_s16 = sshll.u32 %s1621_s15, 4  ;;  %s42_s14 = int_to_ptr.vmem [resolvable:$true] %s41_s14  ;;  %s1694_s16 = int_to_ptr.vmem [resolvable:$true] %s66_s16 }
   0x7   :  { %s1388_s19 = scalar_lea.hbm %s2243_s2, 256 }
   0x8   :  { %p1389_p0 = scmp.ne.s32.totalorder %s2243_s2, %s1388_s19  ;;  %p1392_p1 = scmp.lt.u32.totalorder %s1388_s19, %s2243_s2 }
   0xa   :  { %p1394_p2 = pnand %p1392_p1, %p1389_p0 }
   0xc   :  { %1397 = shalt.err (!%p1394_p2)
}
   0xd   :  { %s1398_s24 = scalar_lea.vmem %s42_s14, 256  ;;  %p1403_p4 = scmp.lt.s32.totalorder %s42_s14, %s42_s14 }
   0xe   :  { %p1399_p3 = scmp.ne.s32.totalorder %s42_s14, %s1398_s24  ;;  %p1404_p5 = scmp.lt.s32.totalorder %s1398_s24, %s1398_s24 }
  0x10   :  { %p1405_p6 = por %p1404_p5, %p1403_p4 }
  0x12   :  { %p1406_p7 = pnand %p1405_p6, %p1399_p3 }
  0x14   :  { %1409 = shalt.err (!%p1406_p7)
}
  0x15   :  { %s1622_s25 = smov 64   ;;  %s1623_s26 = smov 4  }
  0x16   :  { %47 = dma.hbm_to_vmem [thread:$0]  %s2243_s2, 256, %s42_s14, [#allocation7], %s1622_s25, %s1622_s25, %s1623_s26  }
  0x17   :  { %s1410_s11 = scalar_lea.hbm %s2245_s4, 16 }
  0x18   :  { %p1411_p8 = scmp.ne.s32.totalorder %s2245_s4, %s1410_s11  ;;  %p1414_p9 = scmp.lt.u32.totalorder %s1410_s11, %s2245_s4 }
  0x1a   :  { %p1416_p10 = pnand %p1414_p9, %p1411_p8 }
  0x1c   :  { %1419 = shalt.err (!%p1416_p10)
}
  0x1d   :  { %s1420_s18 = scalar_lea.vmem %s1694_s16, 16  ;;  %s1424_s2 = scalar_lea.vmem %s1694_s16, 32 }
  0x1e   :  { %p1421_p11 = scmp.ne.s32.totalorder %s1694_s16, %s1420_s18  ;;  %p1425_p12 = scmp.lt.s32.totalorder %s1694_s16, %s1694_s16 }
  0x1f   :  { %p1426_p13 = scmp.lt.s32.totalorder %s1424_s2, %s1420_s18 }
  0x21   :  { %p1427_p0 = por %p1426_p13, %p1425_p12 }
  0x23   :  { %p1428_p1 = pnand %p1427_p0, %p1421_p11 }
  0x25   :  { %1431 = shalt.err (!%p1428_p1)
}
  0x26   :  { %69 = dma.hbm_to_vmem [thread:$0]  %s2245_s4, 16, %s1694_s16, [#allocation10]  }
  0x27   :  { %s1624_s20 = smov [#allocation12]   ;;  %s1625_s22 = smov [#allocation15]  }
  0x28   :  { %s88_s21 = sshll.u32 %s1624_s20, 4  ;;  %s110_s23 = sshll.u32 %s1625_s22, 4  ;;  %s89_s21 = int_to_ptr.vmem [resolvable:$true] %s88_s21  ;;  %s111_s23 = int_to_ptr.vmem [resolvable:$true] %s110_s23 }
  0x29   :  { %s1432_s28 = scalar_lea.hbm %s2247_s6, 16 }
  0x2a   :  { %p1433_p2 = scmp.ne.s32.totalorder %s2247_s6, %s1432_s28  ;;  %p1436_p3 = scmp.lt.u32.totalorder %s1432_s28, %s2247_s6 }
  0x2c   :  { %p1438_p4 = pnand %p1436_p3, %p1433_p2 }
  0x2e   :  { %1441 = shalt.err (!%p1438_p4)
}
  0x2f   :  { %s1442_s4 = scalar_lea.vmem %s89_s21, 16  ;;  %s1446_s16 = scalar_lea.vmem %s89_s21, 32 }
  0x30   :  { %p1443_p5 = scmp.ne.s32.totalorder %s89_s21, %s1442_s4  ;;  %p1447_p6 = scmp.lt.s32.totalorder %s89_s21, %s89_s21 }
  0x31   :  { %p1448_p7 = scmp.lt.s32.totalorder %s1446_s16, %s1442_s4 }
  0x33   :  { %p1449_p8 = por %p1448_p7, %p1447_p6 }
  0x35   :  { %p1450_p9 = pnand %p1449_p8, %p1443_p5 }
  0x37   :  { %1453 = shalt.err (!%p1450_p9)
}
  0x38   :  { %91 = dma.hbm_to_vmem [thread:$0]  %s2247_s6, 16, %s89_s21, [#allocation13]  }
  0x39   :  { %s1454_s2 = scalar_lea.hbm %s2249_s8, 16 }
  0x3a   :  { %p1455_p10 = scmp.ne.s32.totalorder %s2249_s8, %s1454_s2  ;;  %p1458_p11 = scmp.lt.u32.totalorder %s1454_s2, %s2249_s8 }
  0x3c   :  { %p1460_p12 = pnand %p1458_p11, %p1455_p10 }
  0x3e   :  { %1463 = shalt.err (!%p1460_p12)
}
  0x3f   :  { %s1464_s24 = scalar_lea.vmem %s111_s23, 16  ;;  %s1468_s27 = scalar_lea.vmem %s111_s23, 32 }
  0x40   :  { %p1465_p13 = scmp.ne.s32.totalorder %s111_s23, %s1464_s24  ;;  %p1469_p0 = scmp.lt.s32.totalorder %s111_s23, %s111_s23 }
  0x41   :  { %p1470_p1 = scmp.lt.s32.totalorder %s1468_s27, %s1464_s24 }
  0x43   :  { %p1471_p2 = por %p1470_p1, %p1469_p0 }
  0x45   :  { %p1472_p3 = pnand %p1471_p2, %p1465_p13 }
  0x47   :  { %1475 = shalt.err (!%p1472_p3)
}
  0x48   :  { %113 = dma.hbm_to_vmem [thread:$0]  %s2249_s8, 16, %s111_s23, [#allocation16]  }
  0x49   :  { %s1626_s28 = smov [#allocation3]   ;;  %s1627_s30 = smov [#allocation8]  }
  0x4a   :  { %s29_s29 = sshll.u32 %s1626_s28, 4  ;;  %s53_s11 = sshll.u32 %s1627_s30, 4  ;;  %s30_s29 = int_to_ptr.vmem [resolvable:$true] %s29_s29  ;;  %s1753_s11 = int_to_ptr.vmem [resolvable:$true] %s53_s11 }
  0x4b   :  { %s1476_s16 = scalar_lea.hbm %s2242_s1, 256 }
  0x4c   :  { %p1477_p4 = scmp.ne.s32.totalorder %s2242_s1, %s1476_s16  ;;  %p1480_p5 = scmp.lt.u32.totalorder %s1476_s16, %s2242_s1 }
  0x4e   :  { %p1482_p6 = pnand %p1480_p5, %p1477_p4 }
  0x50   :  { %1485 = shalt.err (!%p1482_p6)
}
  0x51   :  { %s1486_s8 = scalar_lea.vmem %s30_s29, 256  ;;  %p1491_p8 = scmp.lt.s32.totalorder %s30_s29, %s30_s29 }
  0x52   :  { %p1487_p7 = scmp.ne.s32.totalorder %s30_s29, %s1486_s8  ;;  %p1492_p9 = scmp.lt.s32.totalorder %s1486_s8, %s1486_s8 }
  0x54   :  { %p1493_p10 = por %p1492_p9, %p1491_p8 }
  0x56   :  { %p1494_p11 = pnand %p1493_p10, %p1487_p7 }
  0x58   :  { %1497 = shalt.err (!%p1494_p11)
}
  0x59   :  { %35 = dma.hbm_to_vmem [thread:$0]  %s2242_s1, 256, %s30_s29, [#allocation4], %s1622_s25, %s1622_s25, %s1623_s26  }
  0x5a   :  { %s1498_s20 = scalar_lea.hbm %s2244_s3, 128 }
  0x5b   :  { %p1499_p12 = scmp.ne.s32.totalorder %s2244_s3, %s1498_s20  ;;  %p1502_p13 = scmp.lt.u32.totalorder %s1498_s20, %s2244_s3 }
  0x5d   :  { %p1504_p0 = pnand %p1502_p13, %p1499_p12 }
  0x5f   :  { %1507 = shalt.err (!%p1504_p0)
}
  0x60   :  { %s1508_s21 = scalar_lea.vmem %s1753_s11, 128  ;;  %p1513_p2 = scmp.lt.s32.totalorder %s1753_s11, %s1753_s11 }
  0x61   :  { %p1509_p1 = scmp.ne.s32.totalorder %s1753_s11, %s1508_s21  ;;  %p1514_p3 = scmp.lt.s32.totalorder %s1508_s21, %s1508_s21 }
  0x63   :  { %p1515_p4 = por %p1514_p3, %p1513_p2 }
  0x65   :  { %p1516_p5 = pnand %p1515_p4, %p1509_p1 }
  0x67   :  { %1519 = shalt.err (!%p1516_p5)
}
  0x68   :  { %59 = dma.hbm_to_vmem [thread:$0]  %s2244_s3, 128, %s1753_s11, [#allocation7], %s1622_s25, %s1622_s25, %s1623_s26  }
  0x69   :  { %s1628_s29 = smov [#allocation11]   ;;  %s1629_s12 = smov [#allocation14]  }
  0x6a   :  { %s75_s30 = sshll.u32 %s1628_s29, 4  ;;  %s97_s4 = sshll.u32 %s1629_s12, 4  ;;  %s76_s30 = int_to_ptr.vmem [resolvable:$true] %s75_s30  ;;  %s1790_s4 = int_to_ptr.vmem [resolvable:$true] %s97_s4 }
  0x6b   :  { %s1520_s15 = scalar_lea.hbm %s2246_s5, 256 }
  0x6c   :  { %p1521_p6 = scmp.ne.s32.totalorder %s2246_s5, %s1520_s15  ;;  %p1524_p7 = scmp.lt.u32.totalorder %s1520_s15, %s2246_s5 }
  0x6e   :  { %p1526_p8 = pnand %p1524_p7, %p1521_p6 }
  0x70   :  { %1529 = shalt.err (!%p1526_p8)
}
  0x71   :  { %s1530_s3 = scalar_lea.vmem %s76_s30, 256  ;;  %p1535_p10 = scmp.lt.s32.totalorder %s76_s30, %s76_s30 }
  0x72   :  { %p1531_p9 = scmp.ne.s32.totalorder %s76_s30, %s1530_s3  ;;  %p1536_p11 = scmp.lt.s32.totalorder %s1530_s3, %s1530_s3 }
  0x74   :  { %p1537_p12 = por %p1536_p11, %p1535_p10 }
  0x76   :  { %p1538_p13 = pnand %p1537_p12, %p1531_p9 }
  0x78   :  { %1541 = shalt.err (!%p1538_p13)
}
  0x79   :  { %81 = dma.hbm_to_vmem [thread:$0]  %s2246_s5, 256, %s76_s30, [#allocation10], %s1622_s25, %s1622_s25, %s1623_s26  }
  0x7a   :  { %s1542_s20 = scalar_lea.hbm %s2248_s7, 256 }
  0x7b   :  { %p1543_p0 = scmp.ne.s32.totalorder %s2248_s7, %s1542_s20  ;;  %p1546_p1 = scmp.lt.u32.totalorder %s1542_s20, %s2248_s7 }
  0x7d   :  { %p1548_p2 = pnand %p1546_p1, %p1543_p0 }
  0x7f   :  { %1551 = shalt.err (!%p1548_p2)
}
  0x80   :  { %s1552_s21 = scalar_lea.vmem %s1790_s4, 256  ;;  %p1557_p4 = scmp.lt.s32.totalorder %s1790_s4, %s1790_s4 }
  0x81   :  { %p1553_p3 = scmp.ne.s32.totalorder %s1790_s4, %s1552_s21  ;;  %p1558_p5 = scmp.lt.s32.totalorder %s1552_s21, %s1552_s21 }
  0x83   :  { %p1559_p6 = por %p1558_p5, %p1557_p4 }
  0x85   :  { %p1560_p7 = pnand %p1559_p6, %p1553_p3 }
  0x87   :  { %1563 = shalt.err (!%p1560_p7)
}
  0x88   :  { %103 = dma.hbm_to_vmem [thread:$0]  %s2248_s7, 256, %s1790_s4, [#allocation13], %s1622_s25, %s1622_s25, %s1623_s26  }
  0x89   :  { %s1630_s28 = smov [#allocation17]   ;;  %s1564_s16 = scalar_lea.hbm %s2250_s9, 512 }
  0x8a   :  { %s119_s29 = sshll.u32 %s1630_s28, 4  ;;  %p1565_p8 = scmp.ne.s32.totalorder %s2250_s9, %s1564_s16  ;;  %s120_s29 = int_to_ptr.vmem [resolvable:$true] %s119_s29 }
  0x8b   :  { %p1568_p9 = scmp.lt.u32.totalorder %s1564_s16, %s2250_s9 }
  0x8d   :  { %p1570_p10 = pnand %p1568_p9, %p1565_p8 }
  0x8f   :  { %1573 = shalt.err (!%p1570_p10)
}
  0x90   :  { %s1574_s8 = scalar_lea.vmem %s120_s29, 512  ;;  %p1579_p12 = scmp.lt.s32.totalorder %s120_s29, %s120_s29 }
  0x91   :  { %p1575_p11 = scmp.ne.s32.totalorder %s120_s29, %s1574_s8  ;;  %p1580_p13 = scmp.lt.s32.totalorder %s1574_s8, %s1574_s8 }
  0x93   :  { %p1581_p0 = por %p1580_p13, %p1579_p12 }
  0x95   :  { %p1582_p1 = pnand %p1581_p0, %p1575_p11 }
  0x97   :  { %1585 = shalt.err (!%p1582_p1)
}
  0x98   :  { %s1631_s7 = smov 128   ;;  %s1632_s25 = smov 8  }
  0x99   :  { %125 = dma.hbm_to_vmem [thread:$0]  %s2250_s9, 512, %s120_s29, [#allocation16], %s1631_s7, %s1631_s7, %s1632_s25  }
  0x9a   :  { %1608 = dma.done.wait [#allocation4], 256  }
  0x9b   :  { %1609 = vsyncadd [#allocation4], 4294967040 }
  0x9c   :  { %1610 = dma.done.wait [#allocation7], 384  }
  0x9d   :  { %1611 = vsyncadd [#allocation7], 4294966912 }
  0x9e   :  { %1612 = dma.done.wait [#allocation10], 272  }
  0x9f   :  { %1613 = vsyncadd [#allocation10], 4294967024 }
  0xa0   :  { %1614 = dma.done.wait [#allocation13], 272  }
  0xa1   :  { %1615 = vsyncadd [#allocation13], 4294967024 }
  0xa2   :  { %1616 = dma.done.wait [#allocation16], 528  }
  0xa3   :  { %1617 = vsyncadd [#allocation16], 4294966768  ;;  %v1289_v0 = vld [vmem:[#allocation6] sm:$0xff]   ;;  %v1290_v1 = vld [vmem:[#allocation6 + $0x8] sm:$0xff]   ;;  %vm188_vm0 = vcmask 261120   ;;  %vm261_vm1 = vcmask 130048   ;;  %v1860_v57 = vstv %s2241_s0 }
  0xa4   :  { %1222 = vmatprep.subr.bf16.mxu0 %v1289_v0  ;;  %v1291_v2 = vld [vmem:[#allocation3] sm:$0xff]   ;;  %v1843_v3 = vld [vmem:[#allocation3 + $0x8] sm:$0xff]   ;;  %v1295_v12 = vld [vmem:[#allocation11 + $0x8] sm:$0xff]   ;;  %1298 = vrcp.f32 %v1860_v57  ;;  %vm675_vm2 = vcmask 64512   ;;  %s1633_s0 = smov 120   ;;  %s1634_s11 = smov 10  }
  0xa5   :  { %1223 = vmatpush3.bf16.msra.mxu0 %v1289_v0  ;;  %1226 = vmatprep.mubr.msk.bf16.mxu0 %vm188_vm0, %v1291_v2  ;;  %v1293_v4 = vld [vmem:[#allocation8] sm:$0xff]   ;;  %v1294_v11 = vld [vmem:[#allocation11] sm:$0xff]   ;;  %v1177_v13 = vld [vmem:[#allocation9] ss:$0 sm:$0xff]  ;;  %s1635_s2 = smov 26   ;;  %s1636_s14 = smov 1  }
  0xa6   :  { %1224 = vmatprep.subr.bf16.mxu0 %v1290_v1  ;;  %1230 = vmatprep.subr.bf16.mxu1 %v1293_v4  ;;  %v1296_v34 = vld [vmem:[#allocation14] sm:$0xff]   ;;  %v1297_v35 = vld [vmem:[#allocation14 + $0x8] sm:$0xff]   ;;  %v1185_v36 = vld [vmem:[#allocation12] ss:$0 sm:$0xff]  ;;  %s1637_s19 = smov 35   ;;  %s1638_s20 = smov [#allocation18]  }
  0xa7   :  { %1231 = vmatpush3.bf16.msra.mxu1 %v1293_v4  ;;  %v1192_v59 = vld [vmem:[#allocation15] ss:$0 sm:$0xff]  ;;  %s1155_s22 = sshll.u32 %s1638_s20, 4  ;;  %s1156_s22 = int_to_ptr.vmem [resolvable:$true] %s1155_s22 }
  0xa8   :  { %1236 = vmatprep.subr.bf16.mxu1 %v1294_v11  ;;  %s1586_s24 = scalar_lea.vmem %s1156_s22, 512  ;;  %p1591_p3 = scmp.lt.s32.totalorder %s1156_s22, %s1156_s22 }
  0xa9   :  { %1225 = vmatpush3.bf16.msra.mxu0 %v1290_v1  ;;  %p1587_p2 = scmp.ne.s32.totalorder %s1156_s22, %s1586_s24  ;;  %p1592_p4 = scmp.lt.s32.totalorder %s1586_s24, %s1586_s24 }
  0xab   :  { %p1593_p5 = por %p1592_p4, %p1591_p3 }
  0xac   :  { %1227 = vmatmul.mubr.msk.bf16.vlgmr.msra.gmra.mrb[0].mxu0 %vm188_vm0, %v1843_v3 }
  0xad   :  { %1248 = vmatprep.mubr.msk.bf16.mxu0 %vm188_vm0, %v1291_v2  ;;  %p1594_p6 = pnand %p1593_p5, %p1587_p2 }
  0xae   :  { %v1299_v58 = vpop.eup %1298 }
  0xaf   :  { %1268 = vpush %v1299_v58 }
  0xe0   :  { %s1269_s3 = spop %1268 }
 0x17f   :  { %v1228_v5 = vpop.f32.mrb[0].mxu0 }
 0x180   :  { %v229_v6 = vpop.f32.mrb[1].mxu0 }
 0x181   :  { %v1229_v7 = vpop.f32.mrb[2].mxu0 }
 0x182   :  { %v245_v8 = vpack.c.bf16 %v1229_v7, %v1228_v5  ;;  %v232_v9 = vpop.f32.mrb[3].mxu0 }
 0x183   :  { %v244_v10 = vpack.c.bf16 %v232_v9, %v229_v6 }
 0x185   :  { %1232 = vmatprep.mubr.msk.bf16.mxu1 %vm261_vm1, %v244_v10 }
 0x186   :  { %1233 = vmatmul.mubr.msk.bf16.vlgmr.msra.gmra.mrb[0].mxu1 %vm261_vm1, %v245_v8 }
 0x187   :  { %1237 = vmatpush3.bf16.msra.mxu1 %v1294_v11 }
 0x188   :  { %1238 = vmatprep.subr.bf16.mxu1 %v1295_v12 }
 0x18b   :  { %1239 = vmatpush3.bf16.msra.mxu1 %v1295_v12 }
 0x18c   :  { %1252 = vmatprep.subr.bf16.mxu1 %v1296_v34 }
 0x259   :  { %v1234_v14 = vpop.f32.mrb[0].mxu1 }
 0x25a   :  { %v311_v15 = vadd.f32 %v1234_v14, %v1177_v13  ;;  %v302_v16 = vpop.f32.mrb[1].mxu1 }
 0x25b   :  { %v303_v17 = vadd.f32 %v1177_v13, %v302_v16  ;;  %v1235_v18 = vpop.f32.mrb[2].mxu1 }
 0x25c   :  { %v314_v19 = vadd.f32 %v1235_v18, %v1177_v13  ;;  %v305_v20 = vpop.f32.mrb[3].mxu1  ;;  %v319_v22 = vmax.f32 %v311_v15, 0.0 }
 0x25d   :  { %v306_v21 = vadd.f32 %v1177_v13, %v305_v20  ;;  %v317_v24 = vmax.f32 %v303_v17, 0.0 }
 0x25e   :  { %v320_v23 = vmax.f32 %v314_v19, 0.0 }
 0x25f   :  { %v318_v25 = vmax.f32 %v306_v21, 0.0 }
 0x260   :  { %v322_v26 = vpack.c.bf16 %v320_v23, %v319_v22 }
 0x261   :  { %v321_v27 = vpack.c.bf16 %v318_v25, %v317_v24 }
 0x263   :  { %1240 = vmatprep.mubr.msk.bf16.mxu1 %vm188_vm0, %v321_v27 }
 0x264   :  { %1241 = vmatmul.mubr.msk.bf16.vlgmr.msra.gmra.mrb[4].mxu1 %vm188_vm0, %v322_v26 }
 0x265   :  { %1253 = vmatpush3.bf16.msra.mxu1 %v1296_v34 }
 0x266   :  { %1254 = vmatprep.subr.bf16.mxu1 %v1297_v35 }
 0x269   :  { %1255 = vmatpush3.bf16.msra.mxu1 %v1297_v35 }
 0x337   :  { %v1242_v28 = vpop.f32.mrb[4].mxu1 }
 0x338   :  { %v379_v29 = vpop.f32.mrb[5].mxu1 }
 0x339   :  { %v1243_v30 = vpop.f32.mrb[6].mxu1 }
 0x33a   :  { %v395_v31 = vpack.c.bf16 %v1243_v30, %v1242_v28  ;;  %v382_v32 = vpop.f32.mrb[7].mxu1 }
 0x33b   :  { %v394_v33 = vpack.c.bf16 %v382_v32, %v379_v29 }
 0x33d   :  { %1244 = vmatprep.subr.bf16.mxu0 %v394_v33 }
 0x33e   :  { %1245 = vmatpush3.bf16.msra.mxu0 %v394_v33 }
 0x33f   :  { %1246 = vmatprep.subr.bf16.mxu0 %v395_v31 }
 0x342   :  { %1247 = vmatpush3.bf16.msra.mxu0 %v395_v31 }
 0x345   :  { %1249 = vmatmul.mubr.msk.bf16.vlgmr.msra.gmra.mrb[4].mxu0 %vm188_vm0, %v1843_v3 }
 0x346   :  { %1264 = vmatprep.mubr.msk.bf16.mxu0 %vm188_vm0, %v1291_v2 }
 0x418   :  { %v1250_v37 = vpop.f32.mrb[4].mxu0 }
 0x419   :  { %v446_v38 = vadd.f32 %v1250_v37, %v1185_v36  ;;  %v437_v39 = vpop.f32.mrb[5].mxu0 }
 0x41a   :  { %v438_v40 = vadd.f32 %v1185_v36, %v437_v39  ;;  %v1251_v41 = vpop.f32.mrb[6].mxu0 }
 0x41b   :  { %v449_v42 = vadd.f32 %v1251_v41, %v1185_v36  ;;  %v440_v43 = vpop.f32.mrb[7].mxu0  ;;  %v454_v45 = vmax.f32 %v446_v38, 0.0 }
 0x41c   :  { %v441_v44 = vadd.f32 %v1185_v36, %v440_v43  ;;  %v452_v47 = vmax.f32 %v438_v40, 0.0 }
 0x41d   :  { %v455_v46 = vmax.f32 %v449_v42, 0.0 }
 0x41e   :  { %v453_v48 = vmax.f32 %v441_v44, 0.0 }
 0x41f   :  { %v457_v49 = vpack.c.bf16 %v455_v46, %v454_v45 }
 0x420   :  { %v456_v50 = vpack.c.bf16 %v453_v48, %v452_v47 }
 0x422   :  { %1256 = vmatprep.mubr.msk.bf16.mxu1 %vm188_vm0, %v456_v50 }
 0x423   :  { %1257 = vmatmul.mubr.msk.bf16.vlgmr.msra.gmra.mrb[8].mxu1 %vm188_vm0, %v457_v49 }
 0x4f6   :  { %v1258_v51 = vpop.f32.mrb[8].mxu1 }
 0x4f7   :  { %v514_v52 = vpop.f32.mrb[9].mxu1 }
 0x4f8   :  { %v1259_v53 = vpop.f32.mrb[10].mxu1 }
 0x4f9   :  { %v530_v54 = vpack.c.bf16 %v1259_v53, %v1258_v51  ;;  %v517_v55 = vpop.f32.mrb[11].mxu1 }
 0x4fa   :  { %v529_v56 = vpack.c.bf16 %v517_v55, %v514_v52 }
 0x4fc   :  { %1260 = vmatprep.subr.bf16.mxu0 %v529_v56 }
 0x4fd   :  { %1261 = vmatpush3.bf16.msra.mxu0 %v529_v56 }
 0x4fe   :  { %1262 = vmatprep.subr.bf16.mxu0 %v530_v54 }
 0x501   :  { %1263 = vmatpush3.bf16.msra.mxu0 %v530_v54 }
 0x504   :  { %1265 = vmatmul.mubr.msk.bf16.vlgmr.msra.gmra.mrb[8].mxu0 %vm188_vm0, %v1843_v3 }
 0x5d7   :  { %v1266_v60 = vpop.f32.mrb[8].mxu0 }
 0x5d8   :  { %v1863_v61 = vadd.f32 %v1266_v60, %v1192_v59  ;;  %v572_v62 = vpop.f32.mrb[9].mxu0 }
 0x5d9   :  { %v1865_v63 = vadd.f32 %v1192_v59, %v572_v62  ;;  %v1267_v0 = vpop.f32.mrb[10].mxu0 }
 0x5da   :  { %v609_v1 = vand.u32 2147483647, %v1863_v61  ;;  %v1868_v2 = vadd.f32 %v1267_v0, %v1192_v59  ;;  %v575_v3 = vpop.f32.mrb[11].mxu0  ;;  %v1871_v4 = vclamps-f32 %v1863_v61, 40.0  ;;  %v597_v47 = vmax.f32 %v1863_v61, 0.0 }
 0x5db   :  { %v607_v5 = vand.u32 2147483647, %v1865_v63  ;;  %v1874_v6 = vadd.f32 %v1192_v59, %v575_v3  ;;  %v1877_v7 = vclamps-f32 %v1865_v63, 40.0  ;;  %vm601_vm3 = vcmp.ne.f32.partialorder %v1863_v61, %v1863_v61 }
 0x5dc   :  { %v613_v8 = vsub.f32 0.0, %v609_v1  ;;  %v610_v9 = vand.u32 2147483647, %v1868_v2  ;;  %v673_v10 = vmul.f32 %v1871_v4, %v1871_v4  ;;  %v1883_v11 = vclamps-f32 %v1868_v2, 40.0 }
 0x5dd   :  { %v611_v12 = vsub.f32 0.0, %v607_v5  ;;  %v608_v13 = vand.u32 2147483647, %v1874_v6  ;;  %v671_v14 = vmul.f32 %v1877_v7, %v1877_v7  ;;  %v1889_v15 = vclamps-f32 %v1874_v6, 40.0 }
 0x5de   :  { %v619_v16 = vmul.f32 1.442695, %v613_v8  ;;  %v614_v17 = vsub.f32 0.0, %v610_v9  ;;  %v682_v18 = vsel %vm675_vm2, %v673_v10, 0.0  ;;  %v674_v19 = vmul.f32 %v1883_v11, %v1883_v11 }
 0x5df   :  { %v615_v20 = vmul.f32 1.442695, %v611_v12  ;;  %v612_v21 = vsub.f32 0.0, %v608_v13  ;;  %683 = vadd.xlane.f32.xlu1 %v682_v18  ;;  %v676_v22 = vsel %vm675_vm2, %v671_v14, 0.0  ;;  %v672_v23 = vmul.f32 %v1889_v15, %v1889_v15 }
 0x5e0   :  { %1300 = vpow2.f32 %v619_v16  ;;  %v621_v24 = vmul.f32 1.442695, %v614_v17  ;;  %677 = vadd.xlane.f32.xlu0 %v676_v22  ;;  %v685_v26 = vsel %vm675_vm2, %v674_v19, 0.0  ;;  %v595_v52 = vmax.f32 %v1865_v63, 0.0 }
 0x5e1   :  { %1302 = vpow2.f32 %v615_v20  ;;  %v617_v25 = vmul.f32 1.442695, %v612_v21  ;;  %v679_v27 = vsel %vm675_vm2, %v672_v23, 0.0  ;;  %v596_v10 = vmax.f32 %v1874_v6, 0.0 }
 0x5e2   :  { %1304 = vpow2.f32 %v621_v24  ;;  %vm599_vm8 = vcmp.ne.f32.partialorder %v1865_v63, %v1865_v63  ;;  %v598_v16 = vmax.f32 %v1868_v2, 0.0  ;;  %vm600_vm9 = vcmp.ne.f32.partialorder %v1874_v6, %v1874_v6 }
 0x5e3   :  { %1306 = vpow2.f32 %v617_v25  ;;  %686 = vadd.xlane.f32.xlu1 %v685_v26  ;;  %vm602_vm10 = vcmp.ne.f32.partialorder %v1868_v2, %v1868_v2 }
 0x5e4   :  { %680 = vadd.xlane.f32.xlu0 %v679_v27 }
 0x5ea   :  { %v1301_v28 = vpop.eup %1300 }
 0x5eb   :  { %v1303_v29 = vpop.eup %1302  ;;  %v641_v30 = vadd.f32 1.0, %v1301_v28  ;;  %v644_v36 = vmul.f32 -0.5, %v1301_v28  ;;  %v647_v41 = vand.u32 2147483647, %v1301_v28 }
 0x5ec   :  { %v1305_v31 = vpop.eup %1304  ;;  %v623_v32 = vadd.f32 1.0, %v1303_v29  ;;  %v626_v37 = vmul.f32 -0.5, %v1303_v29  ;;  %v629_v43 = vand.u32 2147483647, %v1303_v29 }
 0x5ed   :  { %v1307_v33 = vpop.eup %1306  ;;  %1308 = vlog2.f32 %v641_v30  ;;  %v650_v34 = vadd.f32 1.0, %v1305_v31  ;;  %v653_v38 = vmul.f32 -0.5, %v1305_v31  ;;  %v645_v40 = vadd.f32 1.0, %v644_v36 }
 0x5ee   :  { %1310 = vlog2.f32 %v623_v32  ;;  %v632_v35 = vadd.f32 1.0, %v1307_v33  ;;  %v635_v39 = vmul.f32 -0.5, %v1307_v33  ;;  %v627_v42 = vadd.f32 1.0, %v626_v37 }
 0x5ef   :  { %1312 = vlog2.f32 %v650_v34  ;;  %v654_v44 = vadd.f32 1.0, %v653_v38  ;;  %v656_v45 = vand.u32 2147483647, %v1305_v31  ;;  %v646_v51 = vmul.f32 %v1301_v28, %v645_v40 }
 0x5f0   :  { %1314 = vlog2.f32 %v632_v35  ;;  %v636_v48 = vadd.f32 1.0, %v635_v39  ;;  %v638_v53 = vand.u32 2147483647, %v1307_v33  ;;  %vm648_vm4 = vcmp.lt.f32.partialorder %v647_v41, 0.0004427343 }
 0x5f1   :  { %v628_v56 = vmul.f32 %v1303_v29, %v627_v42  ;;  %vm630_vm5 = vcmp.lt.f32.partialorder %v629_v43, 0.0004427343  ;;  %v655_v62 = vmul.f32 %v1305_v31, %v654_v44  ;;  %vm1903_vm6 = vcmp.lt.f32.partialorder %v656_v45, 0.0004427343 }
 0x5f2   :  { %v637_v8 = vmul.f32 %v1307_v33, %v636_v48  ;;  %vm639_vm7 = vcmp.lt.f32.partialorder %v638_v53, 0.0004427343  ;;  %v1936_v31 = vstv %s1269_s3 }
 0x5f7   :  { %v1309_v46 = vpop.eup %1308 }
 0x5f8   :  { %v1311_v49 = vpop.eup %1310  ;;  %v643_v50 = vmul.f32 0.6931472, %v1309_v46 }
 0x5f9   :  { %v1313_v54 = vpop.eup %1312  ;;  %v625_v55 = vmul.f32 0.6931472, %v1311_v49 }
 0x5fa   :  { %v1315_v58 = vpop.eup %1314  ;;  %v649_v59 = vsel %vm648_vm4, %v646_v51, %v643_v50  ;;  %v652_v60 = vmul.f32 0.6931472, %v1313_v54 }
 0x5fb   :  { %v661_v1 = vadd.f32 %v649_v59, %v597_v47  ;;  %v631_v3 = vsel %vm630_vm5, %v628_v56, %v625_v55  ;;  %v634_v5 = vmul.f32 0.6931472, %v1315_v58 }
 0x5fc   :  { %v659_v9 = vadd.f32 %v631_v3, %v595_v52  ;;  %v658_v12 = vsel %vm1903_vm6, %v655_v62, %v652_v60 }
 0x5fd   :  { %v665_v13 = vsel %vm601_vm3, %v1863_v61, %v661_v1  ;;  %v640_v14 = vsel %vm639_vm7, %v637_v8, %v634_v5  ;;  %v662_v21 = vadd.f32 %v658_v12, %v598_v16 }
 0x5fe   :  { %v1917_v17 = vadd.f32 1e-05, %v665_v13  ;;  %v663_v18 = vsel %vm599_vm8, %v1865_v63, %v659_v9  ;;  %v660_v19 = vadd.f32 %v640_v14, %v596_v10 }
 0x5ff   :  { %v1920_v20 = vadd.f32 1e-05, %v663_v18  ;;  %v666_v63 = vsel %vm602_vm10, %v1868_v2, %v662_v21 }
 0x600   :  { %818 = vrot.lane.b32.xlu1 %v1917_v17, %s1633_s0  ;;  %v664_v61 = vsel %vm600_vm9, %v1874_v6, %v660_v19  ;;  %v1933_v23 = vadd.f32 1e-05, %v666_v63 }
 0x601   :  { %814 = vrot.lane.b32.xlu0 %v1920_v20, %s1633_s0  ;;  %v1927_v22 = vadd.f32 1e-05, %v664_v61 }
 0x604   :  { %816 = vrot.lane.b32.xlu1 %v1927_v22, %s1633_s0 }
 0x608   :  { %820 = vrot.lane.b32.xlu1 %v1933_v23, %s1633_s0 }
 0x66c   :  { %v684_v24 = vpop.xlane.xlu1 %683 }
 0x66d   :  { %1316 = vrsqrt.f32 %v684_v24  ;;  %v678_v25 = vpop.xlane.xlu0 %677  ;;  %vm704_vm11 = vcmp.eq.f32.partialorder %v684_v24, inf  ;;  %v707_v2 = vand.u32 2147483648, %v684_v24  ;;  %vm706_vm12 = vcmp.eq.f32.partialorder %v684_v24, 0.0 }
 0x66e   :  { %1318 = vrsqrt.f32 %v678_v25  ;;  %vm690_vm13 = vcmp.eq.f32.partialorder %v678_v25, inf  ;;  %v693_v33 = vand.u32 2147483648, %v678_v25  ;;  %vm692_vm14 = vcmp.eq.f32.partialorder %v678_v25, 0.0 }
 0x670   :  { %v687_v6 = vpop.xlane.xlu1 %686 }
 0x671   :  { %1320 = vrsqrt.f32 %v687_v6  ;;  %v681_v26 = vpop.xlane.xlu0 %680  ;;  %vm711_vm15 = vcmp.eq.f32.partialorder %v687_v6, inf  ;;  %vm713_vm0 = vcmp.eq.f32.partialorder %v687_v6, 0.0  ;;  %v714_v50 = vand.u32 2147483648, %v687_v6 }
 0x672   :  { %1322 = vrsqrt.f32 %v681_v26  ;;  %vm697_vm1 = vcmp.eq.f32.partialorder %v681_v26, inf  ;;  %vm699_vm3 = vcmp.eq.f32.partialorder %v681_v26, 0.0  ;;  %v700_v43 = vand.u32 2147483648, %v681_v26 }
 0x677   :  { %v1317_v27 = vpop.eup %1316 }
 0x678   :  { %v1319_v28 = vpop.eup %1318  ;;  %v703_v29 = vmul.f32 %v1317_v27, %v684_v24 }
 0x679   :  { %v689_v30 = vmul.f32 %v1319_v28, %v678_v25 }
 0x67a   :  { %v705_v32 = vsel %vm704_vm11, %v684_v24, %v703_v29 }
 0x67b   :  { %v1321_v34 = vpop.eup %1320  ;;  %v708_v35 = vsel %vm706_vm12, %v707_v2, %v705_v32  ;;  %v691_v36 = vsel %vm690_vm13, %v678_v25, %v689_v30  ;;  %v819_v30 = vpop.permute.xlu1 %818 }
 0x67c   :  { %v1323_v37 = vpop.eup %1322  ;;  %v694_v38 = vsel %vm692_vm14, %v693_v33, %v691_v36  ;;  %v710_v39 = vmul.f32 %v1321_v34, %v687_v6  ;;  %v1939_v40 = vmul.f32 %v1936_v31, %v708_v35 }
 0x67d   :  { %v696_v41 = vmul.f32 %v1323_v37, %v681_v26  ;;  %v1942_v42 = vmul.f32 %v1936_v31, %v694_v38 }
 0x67e   :  { %v725_v44 = vmul.f32 1.442695, %v1939_v40  ;;  %v731_v45 = vsub.f32 0.0, %v1939_v40  ;;  %v712_v46 = vsel %vm711_vm15, %v687_v6, %v710_v39  ;;  %vm751_vm5 = vcmp.lt.f32.partialorder %v1939_v40, 0.1 }
 0x67f   :  { %v698_v47 = vsel %vm697_vm1, %v681_v26, %v696_v41  ;;  %v721_v48 = vmul.f32 1.442695, %v1942_v42  ;;  %v729_v49 = vsub.f32 0.0, %v1942_v42  ;;  %vm749_vm4 = vcmp.lt.f32.partialorder %v1942_v42, 0.1 }
 0x680   :  { %v701_v51 = vsel %vm699_vm3, %v700_v43, %v698_v47  ;;  %v753_v52 = vmul.f32 %v1942_v42, %v1942_v42  ;;  %1324 = vpow2.f32 %v725_v44  ;;  %v715_v55 = vsel %vm713_vm0, %v714_v50, %v712_v46  ;;  %v806_v44 = vld [vmem:[#allocation17] sm:$0xff] }
 0x681   :  { %v733_v53 = vmul.f32 1.442695, %v729_v49  ;;  %v1952_v54 = vmul.f32 %v1936_v31, %v701_v51  ;;  %1326 = vpow2.f32 %v721_v48  ;;  %v757_v56 = vsel %vm749_vm4, 1.0, %v1942_v42 }
 0x682   :  { %v737_v58 = vmul.f32 1.442695, %v731_v45  ;;  %v755_v62 = vmul.f32 %v1939_v40, %v1939_v40  ;;  %v761_v0 = vmul.f32 0.008333334, %v753_v52  ;;  %v759_v3 = vsel %vm751_vm5, 1.0, %v1939_v40  ;;  %v815_v45 = vpop.permute.xlu0 %814 }
 0x683   :  { %1328 = vpow2.f32 %v733_v53  ;;  %v723_v59 = vmul.f32 1.442695, %v1952_v54  ;;  %v730_v60 = vsub.f32 0.0, %v1952_v54  ;;  %vm750_vm6 = vcmp.lt.f32.partialorder %v1952_v54, 0.1 }
 0x684   :  { %1330 = vpow2.f32 %v737_v58  ;;  %v754_v5 = vmul.f32 %v1952_v54, %v1952_v54  ;;  %v1970_v8 = vmul.f32 %v1936_v31, %v715_v55  ;;  %v763_v9 = vmul.f32 0.008333334, %v755_v62 }
 0x685   :  { %1332 = vrcp.f32 %v757_v56  ;;  %v735_v1 = vmul.f32 1.442695, %v730_v60  ;;  %v758_v10 = vsel %vm750_vm6, 1.0, %v1952_v54  ;;  %v765_v13 = vadd.f32 0.16666667, %v761_v0  ;;  %v807_v60 = vld [vmem:[#allocation17 + $0x8] sm:$0xff] }
 0x686   :  { %1334 = vpow2.f32 %v723_v59  ;;  %v727_v12 = vmul.f32 1.442695, %v1970_v8  ;;  %v732_v14 = vsub.f32 0.0, %v1970_v8  ;;  %v762_v16 = vmul.f32 0.008333334, %v754_v5 }
 0x687   :  { %1336 = vpow2.f32 %v735_v1  ;;  %v767_v19 = vadd.f32 0.16666667, %v763_v9  ;;  %vm752_vm7 = vcmp.lt.f32.partialorder %v1970_v8, 0.1  ;;  %v756_v63 = vmul.f32 %v1970_v8, %v1970_v8 }
 0x688   :  { %1338 = vrcp.f32 %v759_v3  ;;  %v739_v21 = vmul.f32 1.442695, %v732_v14  ;;  %v769_v25 = vmul.f32 %v765_v13, %v753_v52  ;;  %v766_v27 = vadd.f32 0.16666667, %v762_v16  ;;  %v808_v52 = vld [vmem:[#allocation17 + $0x10] sm:$0xff] }
 0x689   :  { %1340 = vrcp.f32 %v758_v10  ;;  %v760_v28 = vsel %vm752_vm7, 1.0, %v1970_v8  ;;  %v771_v32 = vmul.f32 %v767_v19, %v755_v62  ;;  %v764_v37 = vmul.f32 0.008333334, %v756_v63  ;;  %v817_v62 = vpop.permute.xlu1 %816 }
 0x68a   :  { %v1325_v18 = vpop.eup %1324  ;;  %1342 = vpow2.f32 %v727_v12  ;;  %v773_v39 = vadd.f32 1.0, %v769_v25  ;;  %v770_v47 = vmul.f32 %v766_v27, %v754_v5  ;;  %v1987_v59 = vmul.f32 %v815_v45, %v806_v44 }
 0x68b   :  { %v1327_v61 = vpop.eup %1326  ;;  %1344 = vpow2.f32 %v739_v21  ;;  %v775_v50 = vadd.f32 1.0, %v771_v32  ;;  %v768_v56 = vadd.f32 0.16666667, %v764_v37  ;;  %v1997_v12 = vmul.f32 %v819_v30, %v808_v52 }
 0x68c   :  { %1346 = vrcp.f32 %v760_v28  ;;  %v774_v5 = vadd.f32 1.0, %v770_v47  ;;  %v2001_v14 = vmul.f32 %v817_v62, %v807_v60 }
 0x68d   :  { %v1329_v24 = vpop.eup %1328  ;;  %v772_v16 = vmul.f32 %v768_v56, %v756_v63  ;;  %v821_v54 = vpop.permute.xlu1 %820 }
 0x68e   :  { %v1331_v6 = vpop.eup %1330  ;;  %v777_v26 = vsub.f32 %v1327_v61, %v1329_v24  ;;  %v1983_v29 = vadd.f32 %v1329_v24, %v1327_v61 }
 0x68f   :  { %v1333_v2 = vpop.eup %1332  ;;  %v779_v33 = vsub.f32 %v1325_v18, %v1331_v6  ;;  %v743_v34 = vadd.f32 %v1331_v6, %v1325_v18  ;;  %v809_v6 = vld [vmem:[#allocation17 + $0x18] sm:$0xff] }
 0x690   :  { %v1335_v35 = vpop.eup %1334  ;;  %v781_v36 = vmul.f32 0.5, %v777_v26  ;;  %v776_v26 = vadd.f32 1.0, %v772_v16 }
 0x691   :  { %v1337_v38 = vpop.eup %1336  ;;  %v783_v41 = vmul.f32 0.5, %v779_v33 }
 0x692   :  { %v1339_v43 = vpop.eup %1338  ;;  %v786_v46 = vmul.f32 %v1333_v2, %v781_v36  ;;  %v778_v48 = vsub.f32 %v1335_v35, %v1337_v38  ;;  %v742_v49 = vadd.f32 %v1337_v38, %v1335_v35  ;;  %v2017_v2 = vmul.f32 %v821_v54, %v809_v6 }
 0x693   :  { %v790_v51 = vmul.f32 %v1339_v43, %v783_v41  ;;  %v1341_v58 = vpop.eup %1340  ;;  %v745_v35 = vmul.f32 0.5, %v1983_v29  ;;  %v747_v36 = vmul.f32 0.5, %v743_v34 }
 0x694   :  { %v793_v53 = vsel %vm749_vm4, %v773_v39, %v786_v46  ;;  %v782_v55 = vmul.f32 0.5, %v778_v48  ;;  %v1343_v3 = vpop.eup %1342  ;;  %v746_v38 = vmul.f32 0.5, %v742_v49  ;;  %vm1034_vm4 = vcmask 7168  }
 0x695   :  { %v1990_v0 = vmul.f32 %v1877_v7, %v793_v53  ;;  %v795_v1 = vsel %vm751_vm5, %v775_v50, %v790_v51  ;;  %v1345_v42 = vpop.eup %1344  ;;  %v2027_v37 = vmul.f32 %v745_v35, %v1860_v57  ;;  %v2030_v8 = vmul.f32 %v747_v36, %v1860_v57 }
 0x696   :  { %v788_v9 = vmul.f32 %v1341_v58, %v782_v55  ;;  %v1995_v10 = vmul.f32 %v1871_v4, %v795_v1  ;;  %v780_v40 = vsub.f32 %v1343_v3, %v1345_v42  ;;  %v744_v21 = vadd.f32 %v1345_v42, %v1343_v3  ;;  %v1347_v24 = vpop.eup %1346 }
 0x697   :  { %v830_v13 = vmul.f32 %v1987_v59, %v1990_v0  ;;  %v2035_v39 = vmul.f32 %v746_v38, %v1860_v57  ;;  %v852_v43 = vadd.f32 %v2030_v8, %v1860_v57  ;;  %vm1055_vm5 = vcmask 72712  }
 0x698   :  { %v794_v7 = vsel %vm750_vm6, %v774_v5, %v788_v9  ;;  %v832_v4 = vmul.f32 %v1997_v12, %v1995_v10  ;;  %v784_v61 = vmul.f32 0.5, %v780_v40  ;;  %v748_v41 = vmul.f32 0.5, %v744_v21 }
 0x699   :  { %v834_v18 = vsel %vm675_vm2, %v830_v13, 0.0  ;;  %v2007_v19 = vmul.f32 %v1889_v15, %v794_v7  ;;  %v851_v29 = vadd.f32 %v2035_v39, %v1860_v57  ;;  %vm1060_vm6 = vcmask 80968  }
 0x69a   :  { %835 = vadd.xlane.f32.xlu0 %v834_v18  ;;  %v792_v63 = vmul.f32 %v1347_v24, %v784_v61  ;;  %v840_v28 = vsel %vm675_vm2, %v832_v4, 0.0  ;;  %v2042_v34 = vmul.f32 %v748_v41, %v1860_v57 }
 0x69b   :  { %v831_v25 = vmul.f32 %v2001_v14, %v2007_v19 }
 0x69c   :  { %v796_v15 = vsel %vm752_vm7, %v776_v26, %v792_v63  ;;  %v853_v44 = vadd.f32 %v2042_v34, %v1860_v57  ;;  %vm1081_vm7 = vcmask 146512  }
 0x69d   :  { %v837_v27 = vsel %vm675_vm2, %v831_v25, 0.0  ;;  %v2020_v30 = vmul.f32 %v1883_v11, %v796_v15  ;;  %v850_v11 = vadd.f32 %v2027_v37, %v1860_v57 }
 0x69e   :  { %838 = vadd.xlane.f32.xlu1 %v837_v27  ;;  %841 = vadd.xlane.f32.xlu0 %v840_v28 }
 0x69f   :  { %v833_v32 = vmul.f32 %v2017_v2, %v2020_v30  ;;  %1348 = vrcp.f32 %v850_v11 }
 0x6a0   :  { %1350 = vrcp.f32 %v852_v43 }
 0x6a1   :  { %v843_v33 = vsel %vm675_vm2, %v833_v32, 0.0  ;;  %1352 = vrcp.f32 %v851_v29 }
 0x6a2   :  { %844 = vadd.xlane.f32.xlu0 %v843_v33  ;;  %1354 = vrcp.f32 %v853_v44 }
 0x6a9   :  { %v1349_v47 = vpop.eup %1348 }
 0x6aa   :  { %v1351_v51 = vpop.eup %1350 }
 0x6ab   :  { %v1353_v57 = vpop.eup %1352 }
 0x6ac   :  { %v1355_v16 = vpop.eup %1354 }
 0x727   :  { %v836_v45 = vpop.xlane.xlu0 %835 }
 0x728   :  { %v2047_v46 = vmul.f32 %v836_v45, %v1936_v31 }
 0x72a   :  { %v858_v48 = vmul.f32 %v1349_v47, %v2047_v46  ;;  %v870_v26 = vsub.f32 0.0, %v2047_v46 }
 0x72b   :  { %v839_v49 = vpop.xlane.xlu1 %838  ;;  %v842_v50 = vpop.xlane.xlu0 %841 }
 0x72c   :  { %v2051_v52 = vmul.f32 %v839_v49, %v1936_v31  ;;  %v2054_v53 = vmul.f32 %v842_v50, %v1936_v31  ;;  %v862_v55 = vmul.f32 %v858_v48, %v1990_v0  ;;  %v874_v63 = vmul.f32 %v870_v26, %v2047_v46 }
 0x72e   :  { %v2058_v56 = vadd.f32 %v862_v55, %v1987_v59  ;;  %v859_v58 = vmul.f32 %v1353_v57, %v2051_v52  ;;  %v860_v60 = vmul.f32 %v1351_v51, %v2054_v53 }
 0x72f   :  { %v845_v5 = vpop.xlane.xlu0 %844 }
 0x730   :  { %v878_v62 = vmul.f32 %v2058_v56, %v2058_v56  ;;  %v863_v1 = vmul.f32 %v859_v58, %v2007_v19  ;;  %v864_v3 = vmul.f32 %v860_v60, %v1995_v10  ;;  %v2067_v9 = vmul.f32 %v845_v5, %v1936_v31 }
 0x732   :  { %v882_v42 = vsel %vm675_vm2, %v878_v62, 0.0  ;;  %v2071_v13 = vadd.f32 %v863_v1, %v2001_v14  ;;  %v2074_v7 = vadd.f32 %v864_v3, %v1997_v12  ;;  %v861_v4 = vmul.f32 %v1355_v16, %v2067_v9 }
 0x733   :  { %883 = vadd.xlane.f32.xlu0 %v882_v42  ;;  %v873_v32 = vsub.f32 0.0, %v2067_v9 }
 0x734   :  { %v879_v40 = vmul.f32 %v2071_v13, %v2071_v13  ;;  %v880_v18 = vmul.f32 %v2074_v7, %v2074_v7  ;;  %v865_v24 = vmul.f32 %v861_v4, %v2020_v30 }
 0x735   :  { %v877_v36 = vmul.f32 %v873_v32, %v2067_v9 }
 0x736   :  { %v885_v21 = vsel %vm675_vm2, %v879_v40, 0.0  ;;  %v888_v61 = vsel %vm675_vm2, %v880_v18, 0.0  ;;  %v2085_v25 = vadd.f32 %v865_v24, %v2017_v2 }
 0x737   :  { %886 = vadd.xlane.f32.xlu1 %v885_v21  ;;  %889 = vadd.xlane.f32.xlu0 %v888_v61 }
 0x738   :  { %v881_v6 = vmul.f32 %v2085_v25, %v2085_v25 }
 0x73a   :  { %v891_v54 = vsel %vm675_vm2, %v881_v6, 0.0 }
 0x73b   :  { %892 = vadd.xlane.f32.xlu1 %v891_v54 }
 0x74c   :  { %1071 = vrot.lane.b32.xlu1 %v2007_v19, %s1634_s11 }
 0x74d   :  { %1069 = vrot.lane.b32.xlu0 %v1990_v0, %s1634_s11 }
 0x750   :  { %1075 = vrot.lane.b32.xlu1 %v2020_v30, %s1634_s11 }
 0x751   :  { %1073 = vrot.lane.b32.xlu0 %v1995_v10, %s1634_s11 }
 0x754   :  { %1088 = vrot.lane.b32.xlu1 %v1927_v22, %s1634_s11  ;;  %v871_v22 = vsub.f32 0.0, %v2051_v52 }
 0x755   :  { %1086 = vrot.lane.b32.xlu0 %v1920_v20, %s1634_s11 }
 0x756   :  { %v875_v28 = vmul.f32 %v871_v22, %v2051_v52 }
 0x758   :  { %1092 = vrot.lane.b32.xlu1 %v1933_v23, %s1634_s11 }
 0x759   :  { %1090 = vrot.lane.b32.xlu0 %v1917_v17, %s1634_s11  ;;  %v872_v17 = vsub.f32 0.0, %v2054_v53 }
 0x75c   :  { %1109 = vrot.lane.b32.xlu1 %v2001_v14, %s1635_s2  ;;  %v876_v14 = vmul.f32 %v872_v17, %v2054_v53 }
 0x75d   :  { %1107 = vrot.lane.b32.xlu0 %v1987_v59, %s1635_s2 }
 0x760   :  { %1113 = vrot.lane.b32.xlu1 %v2017_v2, %s1635_s2 }
 0x761   :  { %1111 = vrot.lane.b32.xlu0 %v1997_v12, %s1635_s2 }
 0x7c0   :  { %v884_v20 = vpop.xlane.xlu0 %883 }
 0x7c1   :  { %v894_v27 = vadd.f32 %v884_v20, %v874_v63 }
 0x7c3   :  { %v898_v23 = vmax.f32 %v894_v27, 0.0 }
 0x7c4   :  { %v887_v59 = vpop.xlane.xlu1 %886  ;;  %v890_v15 = vpop.xlane.xlu0 %889 }
 0x7c5   :  { %1356 = vrsqrt.f32 %v898_v23  ;;  %v895_v12 = vadd.f32 %v887_v59, %v875_v28  ;;  %v896_v2 = vadd.f32 %v890_v15, %v876_v14  ;;  %vm904_vm2 = vcmp.eq.f32.partialorder %v898_v23, inf }
 0x7c6   :  { %v907_v44 = vand.u32 2147483648, %v898_v23  ;;  %vm906_vm8 = vcmp.eq.f32.partialorder %v898_v23, 0.0 }
 0x7c7   :  { %v899_v33 = vmax.f32 %v895_v12, 0.0  ;;  %v900_v35 = vmax.f32 %v896_v2, 0.0 }
 0x7c8   :  { %v893_v38 = vpop.xlane.xlu1 %892 }
 0x7c9   :  { %1358 = vrsqrt.f32 %v899_v33  ;;  %v897_v11 = vadd.f32 %v893_v38, %v877_v36  ;;  %vm911_vm9 = vcmp.eq.f32.partialorder %v899_v33, inf  ;;  %vm913_vm10 = vcmp.eq.f32.partialorder %v899_v33, 0.0 }
 0x7ca   :  { %1360 = vrsqrt.f32 %v900_v35  ;;  %v914_v55 = vand.u32 2147483648, %v899_v33  ;;  %vm918_vm11 = vcmp.eq.f32.partialorder %v900_v35, inf  ;;  %vm920_vm12 = vcmp.eq.f32.partialorder %v900_v35, 0.0 }
 0x7cb   :  { %v901_v41 = vmax.f32 %v897_v11, 0.0  ;;  %v921_v1 = vand.u32 2147483648, %v900_v35 }
 0x7cd   :  { %1362 = vrsqrt.f32 %v901_v41  ;;  %vm925_vm14 = vcmp.eq.f32.partialorder %v901_v41, inf  ;;  %v928_v54 = vand.u32 2147483648, %v901_v41  ;;  %vm927_vm15 = vcmp.eq.f32.partialorder %v901_v41, 0.0 }
 0x7cf   :  { %v1357_v43 = vpop.eup %1356 }
 0x7d0   :  { %v903_v29 = vmul.f32 %v1357_v43, %v898_v23 }
 0x7d2   :  { %v905_v45 = vsel %vm904_vm2, %v898_v23, %v903_v29  ;;  %vm1098_vm2 = vcmask 212112  }
 0x7d3   :  { %v908_v47 = vsel %vm906_vm8, %v907_v44, %v905_v45  ;;  %v1359_v48 = vpop.eup %1358  ;;  %vm1119_vm8 = vcmask 277712  }
 0x7d4   :  { %v2111_v49 = vmul.f32 %v908_v47, %v1936_v31  ;;  %v1361_v50 = vpop.eup %1360  ;;  %v910_v51 = vmul.f32 %v1359_v48, %v899_v33 }
 0x7d5   :  { %v917_v57 = vmul.f32 %v1361_v50, %v900_v35 }
 0x7d6   :  { %v934_v58 = vmul.f32 1.442695, %v2111_v49  ;;  %v942_v60 = vsub.f32 0.0, %v2111_v49  ;;  %v912_v62 = vsel %vm911_vm9, %v899_v33, %v910_v51  ;;  %vm962_vm13 = vcmp.lt.f32.partialorder %v2111_v49, 0.1 }
 0x7d7   :  { %v915_v3 = vsel %vm913_vm10, %v914_v55, %v912_v62  ;;  %v919_v5 = vsel %vm918_vm11, %v900_v35, %v917_v57  ;;  %v966_v16 = vmul.f32 %v2111_v49, %v2111_v49  ;;  %v1363_v4 = vpop.eup %1362  ;;  %v970_v24 = vsel %vm962_vm13, 1.0, %v2111_v49 }
 0x7d8   :  { %v946_v42 = vmul.f32 1.442695, %v942_v60  ;;  %v922_v40 = vsel %vm920_vm12, %v921_v1, %v919_v5  ;;  %1364 = vpow2.f32 %v934_v58  ;;  %v2119_v18 = vmul.f32 %v915_v3, %v1936_v31 }
 0x7d9   :  { %v2122_v21 = vmul.f32 %v922_v40, %v1936_v31  ;;  %v924_v61 = vmul.f32 %v1363_v4, %v901_v41  ;;  %v974_v26 = vmul.f32 0.008333334, %v966_v16  ;;  %vm1124_vm9 = vcmask 285968  }
 0x7da   :  { %1366 = vpow2.f32 %v946_v42  ;;  %v943_v6 = vsub.f32 0.0, %v2119_v18  ;;  %v936_v17 = vmul.f32 1.442695, %v2119_v18  ;;  %vm963_vm1 = vcmp.lt.f32.partialorder %v2119_v18, 0.1 }
 0x7db   :  { %v938_v63 = vmul.f32 1.442695, %v2122_v21  ;;  %v944_v20 = vsub.f32 0.0, %v2122_v21  ;;  %v926_v22 = vsel %vm925_vm14, %v901_v41, %v924_v61  ;;  %vm964_vm0 = vcmp.lt.f32.partialorder %v2122_v21, 0.1 }
 0x7dc   :  { %v929_v27 = vsel %vm927_vm15, %v928_v54, %v926_v22  ;;  %1368 = vrcp.f32 %v970_v24  ;;  %v968_v28 = vmul.f32 %v2122_v21, %v2122_v21  ;;  %v948_v14 = vmul.f32 1.442695, %v943_v6 }
 0x7dd   :  { %v950_v23 = vmul.f32 1.442695, %v944_v20  ;;  %1370 = vpow2.f32 %v938_v63  ;;  %v2135_v59 = vmul.f32 %v929_v27, %v1936_v31  ;;  %v978_v15 = vadd.f32 0.16666667, %v974_v26 }
 0x7de   :  { %v972_v12 = vsel %vm964_vm0, 1.0, %v2122_v21  ;;  %v976_v33 = vmul.f32 0.008333334, %v968_v28  ;;  %v967_v38 = vmul.f32 %v2119_v18, %v2119_v18  ;;  %v971_v44 = vsel %vm963_vm1, 1.0, %v2119_v18 }
 0x7df   :  { %1372 = vpow2.f32 %v950_v23  ;;  %v940_v2 = vmul.f32 1.442695, %v2135_v59  ;;  %v945_v32 = vsub.f32 0.0, %v2135_v59  ;;  %v969_v35 = vmul.f32 %v2135_v59, %v2135_v59 }
 0x7e0   :  { %1374 = vpow2.f32 %v936_v17  ;;  %vm965_vm3 = vcmp.lt.f32.partialorder %v2135_v59, 0.1  ;;  %v982_v41 = vmul.f32 %v978_v15, %v966_v16  ;;  %v980_v45 = vadd.f32 0.16666667, %v976_v33 }
 0x7e1   :  { %1376 = vpow2.f32 %v948_v14  ;;  %v952_v36 = vmul.f32 1.442695, %v945_v32  ;;  %v973_v47 = vsel %vm965_vm3, 1.0, %v2135_v59  ;;  %v977_v48 = vmul.f32 0.008333334, %v969_v35 }
 0x7e2   :  { %v1365_v31 = vpop.eup %1364  ;;  %1378 = vrcp.f32 %v972_v12  ;;  %v975_v51 = vmul.f32 0.008333334, %v967_v38  ;;  %v986_v60 = vadd.f32 1.0, %v982_v41  ;;  %v984_v3 = vmul.f32 %v980_v45, %v968_v28 }
 0x7e3   :  { %1380 = vpow2.f32 %v940_v2  ;;  %v981_v5 = vadd.f32 0.16666667, %v977_v48  ;;  %vm1145_vm10 = vcmask 351512  }
 0x7e4   :  { %v1367_v11 = vpop.eup %1366  ;;  %1382 = vpow2.f32 %v952_v36  ;;  %v979_v61 = vadd.f32 0.16666667, %v975_v51  ;;  %v988_v12 = vadd.f32 1.0, %v984_v3 }
 0x7e5   :  { %v954_v43 = vadd.f32 %v1367_v11, %v1365_v31  ;;  %v990_v29 = vsub.f32 %v1365_v31, %v1367_v11  ;;  %1384 = vrcp.f32 %v971_v44  ;;  %v985_v33 = vmul.f32 %v981_v5, %v969_v35 }
 0x7e6   :  { %v1369_v55 = vpop.eup %1368  ;;  %1386 = vrcp.f32 %v973_v47  ;;  %v983_v32 = vmul.f32 %v979_v61, %v967_v38 }
 0x7e7   :  { %v994_v50 = vmul.f32 0.5, %v990_v29  ;;  %v958_v57 = vmul.f32 0.5, %v954_v43  ;;  %v1371_v58 = vpop.eup %1370 }
 0x7e9   :  { %v999_v62 = vmul.f32 %v1369_v55, %v994_v50  ;;  %v1373_v1 = vpop.eup %1372  ;;  %v1022_v54 = vmul.f32 %v958_v57, %v1990_v0  ;;  %v1010_v63 = vmul.f32 %v958_v57, %v2027_v37  ;;  %v987_v50 = vadd.f32 1.0, %v983_v32 }
 0x7ea   :  { %v1375_v42 = vpop.eup %1374  ;;  %v956_v40 = vadd.f32 %v1373_v1, %v1371_v58  ;;  %v992_v4 = vsub.f32 %v1371_v58, %v1373_v1  ;;  %v989_v57 = vadd.f32 1.0, %v985_v33 }
 0x7eb   :  { %v1006_v16 = vsel %vm962_vm13, %v986_v60, %v999_v62  ;;  %v1377_v24 = vpop.eup %1376 }
 0x7ec   :  { %v1014_v6 = vmul.f32 %v1006_v16, %v2047_v46  ;;  %v1026_v26 = vmul.f32 %v1006_v16, %v2058_v56  ;;  %v1379_v20 = vpop.eup %1378  ;;  %v960_v22 = vmul.f32 0.5, %v956_v40  ;;  %v996_v17 = vmul.f32 0.5, %v992_v4 }
 0x7ed   :  { %v991_v27 = vsub.f32 %v1375_v42, %v1377_v24  ;;  %v1381_v23 = vpop.eup %1380  ;;  %v955_v14 = vadd.f32 %v1377_v24, %v1375_v42 }
 0x7ee   :  { %v1030_v49 = vadd.f32 %v1026_v26, %v1022_v54  ;;  %v1018_v28 = vadd.f32 %v1014_v6, %v1010_v63  ;;  %v1383_v15 = vpop.eup %1382  ;;  %v1003_v2 = vmul.f32 %v1379_v20, %v996_v17  ;;  %v1024_v41 = vmul.f32 %v960_v22, %v1995_v10 }
 0x7ef   :  { %v957_v0 = vadd.f32 %v1383_v15, %v1381_v23  ;;  %v993_v31 = vsub.f32 %v1381_v23, %v1383_v15  ;;  %v995_v36 = vmul.f32 0.5, %v991_v27  ;;  %v1012_v43 = vmul.f32 %v960_v22, %v2030_v8  ;;  %v1385_v29 = vpop.eup %1384 }
 0x7f0   :  { %1043 = vrot.lane.b32.xlu0 %v1030_v49, %s1636_s14  ;;  %1035 = vst.msk [vmem:[#allocation18] sm:$0xff] %vm1034_vm4, %v1018_v28  ;;  %v1008_v11 = vsel %vm964_vm0, %v988_v12, %v1003_v2  ;;  %v959_v47 = vmul.f32 0.5, %v955_v14  ;;  %v1387_v48 = vpop.eup %1386 }
 0x7f1   :  { %v1016_v44 = vmul.f32 %v1008_v11, %v2054_v53  ;;  %v1028_v38 = vmul.f32 %v1008_v11, %v2074_v7  ;;  %v997_v45 = vmul.f32 0.5, %v993_v31  ;;  %v961_v35 = vmul.f32 0.5, %v957_v0 }
 0x7f2   :  { %v1001_v51 = vmul.f32 %v1385_v29, %v995_v36  ;;  %v1011_v62 = vmul.f32 %v959_v47, %v2035_v39  ;;  %v1023_v4 = vmul.f32 %v959_v47, %v2007_v19 }
 0x7f3   :  { %v1032_v21 = vadd.f32 %v1028_v38, %v1024_v41  ;;  %v1020_v55 = vadd.f32 %v1016_v44, %v1012_v43  ;;  %v1005_v10 = vmul.f32 %v1387_v48, %v997_v45  ;;  %v1025_v5 = vmul.f32 %v961_v35, %v2020_v30  ;;  %v1070_v30 = vpop.permute.xlu0 %1069 }
 0x7f4   :  { %1133 = vrot.lane.b32.xlu0 %v2058_v56, %s1637_s19  ;;  %v1007_v58 = vsel %vm963_vm1, %v987_v50, %v1001_v51  ;;  %v1013_v56 = vmul.f32 %v961_v35, %v2042_v34 }
 0x7f5   :  { %1047 = vrot.lane.b32.xlu1 %v1032_v21, %s1636_s14  ;;  %v1009_v60 = vsel %vm965_vm3, %v989_v57, %v1005_v10  ;;  %v1015_v1 = vmul.f32 %v1007_v58, %v2051_v52  ;;  %1037 = vst.msk [vmem:[#allocation18 + $0x10] sm:$0xff] %vm1034_vm4, %v1020_v55  ;;  %v1027_v40 = vmul.f32 %v1007_v58, %v2071_v13 }
 0x7f6   :  { %v1017_v3 = vmul.f32 %v1009_v60, %v2067_v9  ;;  %v1029_v18 = vmul.f32 %v1009_v60, %v2085_v25 }
 0x7f7   :  { %v1019_v42 = vadd.f32 %v1015_v1, %v1011_v62  ;;  %v1031_v61 = vadd.f32 %v1027_v40, %v1023_v4  ;;  %v1074_v24 = vpop.permute.xlu0 %1073 }
 0x7f8   :  { %1137 = vrot.lane.b32.xlu0 %v2074_v7, %s1637_s19  ;;  %v1021_v16 = vadd.f32 %v1017_v3, %v1013_v56  ;;  %v1033_v59 = vadd.f32 %v1029_v18, %v1025_v5  ;;  %v1072_v7 = vpop.permute.xlu1 %1071 }
 0x7f9   :  { %1036 = vst.msk [vmem:[#allocation18 + $0x8] sm:$0xff] %vm1034_vm4, %v1019_v42 }
 0x7fa   :  { %1049 = vrot.lane.b32.xlu1 %v1033_v59, %s1636_s14  ;;  %1038 = vst.msk [vmem:[#allocation18 + $0x18] sm:$0xff] %vm1034_vm4, %v1021_v16 }
 0x7fb   :  { %v1087_v54 = vpop.permute.xlu0 %1086 }
 0x7fc   :  { %v1076_v6 = vpop.permute.xlu1 %1075 }
 0x7fe   :  { %1045 = vrot.lane.b32.xlu1 %v1031_v61, %s1636_s14 }
 0x7ff   :  { %v1091_v63 = vpop.permute.xlu0 %1090 }
 0x800   :  { %v1089_v26 = vpop.permute.xlu1 %1088 }
 0x802   :  { %1135 = vrot.lane.b32.xlu1 %v2071_v13, %s1637_s19 }
 0x803   :  { %v1108_v22 = vpop.permute.xlu0 %1107 }
 0x804   :  { %v1093_v20 = vpop.permute.xlu1 %1092 }
 0x806   :  { %1139 = vrot.lane.b32.xlu1 %v2085_v25, %s1637_s19 }
 0x807   :  { %v1112_v19 = vpop.permute.xlu0 %1111 }
 0x808   :  { %v1110_v17 = vpop.permute.xlu1 %1109 }
 0x80c   :  { %v1114_v13 = vpop.permute.xlu1 %1113 }
 0x862   :  { %v1044_v27 = vpop.permute.xlu0 %1043 }
 0x863   :  { %1056 = vst.msk [vmem:[#allocation18] sm:$0xff] %vm1055_vm5, %v1044_v27 }
 0x864   :  { %1061 = vst.msk [vmem:[#allocation18] sm:$0xff] %vm1060_vm6, %v2027_v37 }
 0x865   :  { %1082 = vst.msk [vmem:[#allocation18] sm:$0xff] %vm1081_vm7, %v1070_v30 }
 0x866   :  { %1099 = vst.msk [vmem:[#allocation18] sm:$0xff] %vm1098_vm2, %v1087_v54  ;;  %v1134_v23 = vpop.permute.xlu0 %1133 }
 0x867   :  { %1120 = vst.msk [vmem:[#allocation18] sm:$0xff] %vm1119_vm8, %v1108_v22  ;;  %v1048_v25 = vpop.permute.xlu1 %1047 }
 0x868   :  { %1125 = vst.msk [vmem:[#allocation18] sm:$0xff] %vm1124_vm9, %v2047_v46 }
 0x869   :  { %1058 = vst.msk [vmem:[#allocation18 + $0x10] sm:$0xff] %vm1055_vm5, %v1048_v25 }
 0x86a   :  { %1146 = vst.msk [vmem:[#allocation18] sm:$0xff] %vm1145_vm10, %v1134_v23  ;;  %v1138_v46 = vpop.permute.xlu0 %1137 }
 0x86b   :  { %1063 = vst.msk [vmem:[#allocation18 + $0x10] sm:$0xff] %vm1060_vm6, %v2030_v8 }
 0x86c   :  { %1084 = vst.msk [vmem:[#allocation18 + $0x10] sm:$0xff] %vm1081_vm7, %v1074_v24  ;;  %v1050_v37 = vpop.permute.xlu1 %1049 }
 0x86d   :  { %1101 = vst.msk [vmem:[#allocation18 + $0x10] sm:$0xff] %vm1098_vm2, %v1091_v63 }
 0x86e   :  { %1122 = vst.msk [vmem:[#allocation18 + $0x10] sm:$0xff] %vm1119_vm8, %v1112_v19 }
 0x86f   :  { %1059 = vst.msk [vmem:[#allocation18 + $0x18] sm:$0xff] %vm1055_vm5, %v1050_v37 }
 0x870   :  { %1127 = vst.msk [vmem:[#allocation18 + $0x10] sm:$0xff] %vm1124_vm9, %v2054_v53  ;;  %v1046_v8 = vpop.permute.xlu1 %1045 }
 0x871   :  { %1064 = vst.msk [vmem:[#allocation18 + $0x18] sm:$0xff] %vm1060_vm6, %v2042_v34 }
 0x872   :  { %1148 = vst.msk [vmem:[#allocation18 + $0x10] sm:$0xff] %vm1145_vm10, %v1138_v46 }
 0x873   :  { %1085 = vst.msk [vmem:[#allocation18 + $0x18] sm:$0xff] %vm1081_vm7, %v1076_v6 }
 0x874   :  { %1102 = vst.msk [vmem:[#allocation18 + $0x18] sm:$0xff] %vm1098_vm2, %v1093_v20  ;;  %v1136_v34 = vpop.permute.xlu1 %1135 }
 0x875   :  { %1123 = vst.msk [vmem:[#allocation18 + $0x18] sm:$0xff] %vm1119_vm8, %v1114_v13 }
 0x876   :  { %1057 = vst.msk [vmem:[#allocation18 + $0x8] sm:$0xff] %vm1055_vm5, %v1046_v8 }
 0x877   :  { %1062 = vst.msk [vmem:[#allocation18 + $0x8] sm:$0xff] %vm1060_vm6, %v2035_v39 }
 0x878   :  { %1128 = vst.msk [vmem:[#allocation18 + $0x18] sm:$0xff] %vm1124_vm9, %v2067_v9  ;;  %v1140_v53 = vpop.permute.xlu1 %1139 }
 0x879   :  { %1083 = vst.msk [vmem:[#allocation18 + $0x8] sm:$0xff] %vm1081_vm7, %v1072_v7 }
 0x87a   :  { %1100 = vst.msk [vmem:[#allocation18 + $0x8] sm:$0xff] %vm1098_vm2, %v1089_v26 }
 0x87b   :  { %1121 = vst.msk [vmem:[#allocation18 + $0x8] sm:$0xff] %vm1119_vm8, %v1110_v17 }
 0x87c   :  { %1126 = vst.msk [vmem:[#allocation18 + $0x8] sm:$0xff] %vm1124_vm9, %v2051_v52 }
 0x87d   :  { %1147 = vst.msk [vmem:[#allocation18 + $0x8] sm:$0xff] %vm1145_vm10, %v1136_v34  ;;  %1149 = vst.msk [vmem:[#allocation18 + $0x18] sm:$0xff] %vm1145_vm10, %v1140_v53 }
 0x87e   :  { %1597 = shalt.err (!%p1594_p6)
}
 0x87f   :  { %s1598_s21 = scalar_lea.hbm %s2251_s10, 512 }
 0x880   :  { %p1599_p7 = scmp.ne.s32.totalorder %s2251_s10, %s1598_s21  ;;  %p1602_p8 = scmp.lt.u32.totalorder %s1598_s21, %s2251_s10 }
 0x882   :  { %p1604_p9 = pnand %p1602_p8, %p1599_p7 }
 0x884   :  { %1607 = shalt.err (!%p1604_p9)
}
 0x885   :  { %1161 = dma.vmem_to_hbm [thread:$0]  %s1156_s22, 512, %s2251_s10, [#allocation5], %s1631_s7, %s1631_s7, %s1632_s25  }
 0x886   :  { %1618 = dma.done.wait [#allocation5], 512  }
 0x887   :  { %1619 = vsyncadd [#allocation5], 4294966784 }
 0x888   :  { %1165 = vsyncpa [#allocation4], 1 }
 0x889   :  { %1166 = vsyncpa [#allocation7], 1 }
 0x88a   :  { %1167 = vsyncpa [#allocation10], 1 }
 0x88b   :  { %1168 = vsyncpa [#allocation13], 1 }
 0x88c   :  { %1169 = vsyncpa [#allocation16], 1 }
 0x88d   :  { %1170 = vsyncpa [#allocation5], 1 }

</bundles_post_ra>
